<compile_context>
chip_gen: v7x
topology: tpu7x:2x2x1
jax: 0.10.0
libtpu: 0.0.40
codegen_flags: <defaults>
</compile_context>

<pallas_src>
import functools
import math

import jax
import jax.numpy as jnp
from jax.experimental import pallas as pl
from jax.experimental.pallas import tpu as pltpu


def _mha_kernel(x_ref, wq_ref, wk_ref, wv_ref, wo_ref,
                out_ref, k_cache, v_cache, *, num_heads, tile_q):
    # x_ref  : (1, N, C)    full sequence for this batch element (resident)
    # wq/wk/wv_ref: (C, C)  bf16 projection weights
    # wo_ref : (H, Dh, C)   bf16 output projection, head-major
    # out_ref: (1, TQ, C)
    # k_cache/v_cache: (H, N, Dh) bf16 VMEM scratch, persistent across qi steps
    qi = pl.program_id(1)
    C = x_ref.shape[2]
    H = num_heads
    Dh = C // H
    scale = 1.0 / math.sqrt(Dh)

    def split_heads(y):
        # (R, C) f32 -> (H, R, Dh) bf16, head-major (layout plumbing only).
        return jnp.stack(
            [y[:, h * Dh:(h + 1) * Dh] for h in range(H)], axis=0
        ).astype(jnp.bfloat16)

    # ---- K/V projection: once per batch element, cached in VMEM scratch ----
    @pl.when(qi == 0)
    def _():
        xkv = x_ref[0].astype(jnp.bfloat16)                          # (N, C)
        k = jnp.dot(xkv, wk_ref[...], preferred_element_type=jnp.float32)
        v = jnp.dot(xkv, wv_ref[...], preferred_element_type=jnp.float32)
        k_cache[...] = split_heads(k)                                # (H, N, Dh)
        v_cache[...] = split_heads(v)

    # ---- Q projection for this query tile (sliced from the resident block) ----
    q_start = pl.multiple_of(qi * tile_q, tile_q)
    xq = x_ref[0, pl.ds(q_start, tile_q), :].astype(jnp.bfloat16)    # (TQ, C)
    q = jnp.dot(xq, wq_ref[...], preferred_element_type=jnp.float32) * scale
    qh = split_heads(q)                                              # (H, TQ, Dh)

    # ---- attention, all heads fused; key axis N sits on lanes ----
    s = jnp.einsum("hqd,hkd->hqk", qh, k_cache[...],
                   preferred_element_type=jnp.float32)               # (H, TQ, N)
    m = jnp.max(s, axis=-1, keepdims=True)
    p = jnp.exp(s - m)                                               # EUP
    l = jnp.sum(p, axis=-1, keepdims=True)
    w = p * pl.reciprocal(l, approx=True)                            # EUP
    o = jnp.einsum("hqk,hkd->hqd", w.astype(jnp.bfloat16), v_cache[...],
                   preferred_element_type=jnp.float32)               # (H, TQ, Dh)

    # ---- output projection: per-head batched matmul + sum over heads ----
    # == concat(heads) @ Wo, without a lane-axis concatenate.
    out_h = jnp.einsum("hqd,hdc->hqc", o.astype(jnp.bfloat16), wo_ref[...],
                       preferred_element_type=jnp.float32)           # (H, TQ, C)
    out_ref[0] = jnp.sum(out_h, axis=0).astype(out_ref.dtype)


def mha_forward(x, params, *, tile_q=None):
    """Multi-head self-attention (eval mode). x: (B, N, C) -> (B, N, C)."""
    B, N, C = x.shape
    H = int(params["num_heads"])
    assert C % H == 0, "embed_dim must be divisible by num_heads"
    Dh = C // H

    if tile_q is None:
        tile_q = min(N, 128)
    # TODO(synk): pad N (and C) to TPU-friendly multiples for ragged shapes;
    # here an even query tiling is required.
    assert N % tile_q == 0 and (tile_q % 8 == 0 or tile_q == N)

    # bf16 operands for the MXU (f32 accumulation inside the kernel).
    wq = params["wq"].astype(jnp.bfloat16)
    wk = params["wk"].astype(jnp.bfloat16)
    wv = params["wv"].astype(jnp.bfloat16)
    wo = params["wo"].reshape(H, Dh, C).astype(jnp.bfloat16)   # head-major

    kernel = functools.partial(_mha_kernel, num_heads=H, tile_q=tile_q)

    return pl.pallas_call(
        kernel,
        out_shape=jax.ShapeDtypeStruct((B, N, C), x.dtype),
        grid_spec=pltpu.PrefetchScalarGridSpec(
            num_scalar_prefetch=0,
            grid=(B, N // tile_q),
            in_specs=[
                # x: full sequence block, re-DMA'd only when the batch index changes
                pl.BlockSpec((1, N, C), lambda b, qi: (b, 0, 0)),
                pl.BlockSpec((C, C), lambda b, qi: (0, 0)),          # Wq
                pl.BlockSpec((C, C), lambda b, qi: (0, 0)),          # Wk
                pl.BlockSpec((C, C), lambda b, qi: (0, 0)),          # Wv
                pl.BlockSpec((H, Dh, C), lambda b, qi: (0, 0, 0)),   # Wo (head-major)
            ],
            out_specs=pl.BlockSpec((1, tile_q, C), lambda b, qi: (b, qi, 0)),
            scratch_shapes=[
                pltpu.VMEM((H, N, Dh), jnp.bfloat16),   # K cache, head-major
                pltpu.VMEM((H, N, Dh), jnp.bfloat16),   # V cache, head-major
            ],
        ),
        compiler_params=pltpu.CompilerParams(
            dimension_semantics=("parallel", "arbitrary"),
        ),
    )(x, wq, wk, wv, wo)


def mha_ref(x, params):
    """Pure-JAX float32 reference (same math, eval-mode MultiheadAttention)."""
    B, N, C = x.shape
    H = int(params["num_heads"])
    Dh = C // H
    q = x @ params["wq"]
    k = x @ params["wk"]
    v = x @ params["wv"]
    q = q.reshape(B, N, H, Dh)
    k = k.reshape(B, N, H, Dh)
    v = v.reshape(B, N, H, Dh)
    s = jnp.einsum("bqhd,bkhd->bhqk", q, k) / math.sqrt(Dh)
    w = jax.nn.softmax(s, axis=-1)
    o = jnp.einsum("bhqk,bkhd->bqhd", w, v).reshape(B, N, C)
    return o @ params["wo"]


if __name__ == "__main__":
    # Small but lane-dense demo shapes: (batch, seq, embed) = (2, 128, 128), 4 heads.
    B, N, C, H = 2, 128, 128, 4

    key = jax.random.PRNGKey(0)
    kx, kq, kk, kv, ko = jax.random.split(key, 5)
    x = jax.random.normal(kx, (B, N, C), dtype=jnp.float32)

    # Synthetic nn.MultiheadAttention(embed_dim=C, num_heads=H, bias=False) weights,
    # stored as right-multiply matrices (a real converter would transpose PyTorch's).
    w_scale = 1.0 / math.sqrt(C)
    params = {
        "num_heads": H,
        "wq": w_scale * jax.random.normal(kq, (C, C), dtype=jnp.float32),
        "wk": w_scale * jax.random.normal(kk, (C, C), dtype=jnp.float32),
        "wv": w_scale * jax.random.normal(kv, (C, C), dtype=jnp.float32),
        "wo": w_scale * jax.random.normal(ko, (C, C), dtype=jnp.float32),
    }

    out = jax.block_until_ready(mha_forward(x, params, tile_q=64))
    ref = jax.block_until_ready(mha_ref(x, params))

    assert out.shape == (B, N, C), out.shape
    max_err = float(jnp.max(jnp.abs(out - ref)))
    # bf16 MXU operands (f32 accumulation) + approx reciprocal -> relaxed tolerance.
    assert jnp.allclose(out, ref, atol=5e-2, rtol=5e-2), max_err
    print("KERNEL_OK")
</pallas_src>

<mosaic_0001>
module attributes {stable_mosaic.version = 11 : i64} {
  func.func @_mha_kernel(%arg0: i32, %arg1: i32, %arg2: memref<1x128x128xf32, #tpu.memory_space<vmem>>, %arg3: memref<128x128xbf16, #tpu.memory_space<vmem>>, %arg4: memref<128x128xbf16, #tpu.memory_space<vmem>>, %arg5: memref<128x128xbf16, #tpu.memory_space<vmem>>, %arg6: memref<4x32x128xbf16, #tpu.memory_space<vmem>>, %arg7: memref<1x64x128xf32, #tpu.memory_space<vmem>>, %arg8: memref<4x128x32xbf16, #tpu.memory_space<vmem>>, %arg9: memref<4x128x32xbf16, #tpu.memory_space<vmem>>) attributes {dimension_semantics = [#tpu.dimension_semantics<parallel>, #tpu.dimension_semantics<arbitrary>], iteration_bounds = array<i64: 2, 2>, scalar_prefetch = 0 : i64, scratch_operands = 2 : i64, tpu.core_type = #tpu.core_type<tc>, window_params = [{transform_indices = @transform_0, window_bounds = array<i64: 1, 128, 128>}, {pipeline_mode = #tpu.pipeline_mode<synchronous>, transform_indices = @transform_1, window_bounds = array<i64: 128, 128>}, {pipeline_mode = #tpu.pipeline_mode<synchronous>, transform_indices = @transform_2, window_bounds = array<i64: 128, 128>}, {pipeline_mode = #tpu.pipeline_mode<synchronous>, transform_indices = @transform_3, window_bounds = array<i64: 128, 128>}, {pipeline_mode = #tpu.pipeline_mode<synchronous>, transform_indices = @transform_4, window_bounds = array<i64: 4, 32, 128>}, {transform_indices = @transform_5, window_bounds = array<i64: 1, 64, 128>}]} {
    %c0_i32 = arith.constant 0 : i32
    %0 = arith.cmpi eq, %arg1, %c0_i32 : i32
    %1 = arith.extui %0 : i1 to i32
    %c0_i32_0 = arith.constant 0 : i32
    %2 = arith.cmpi ne, %1, %c0_i32_0 : i32
    scf.if %2 {
      %c0_23 = arith.constant 0 : index
      %c0_24 = arith.constant 0 : index
      %c0_25 = arith.constant 0 : index
      %45 = vector.load %arg2[%c0_23, %c0_24, %c0_25] : memref<1x128x128xf32, #tpu.memory_space<vmem>>, vector<1x128x128xf32>
      %46 = vector.shape_cast %45 : vector<1x128x128xf32> to vector<128x128xf32>
      %47 = arith.truncf %46 : vector<128x128xf32> to vector<128x128xbf16>
      %c0_26 = arith.constant 0 : index
      %c0_27 = arith.constant 0 : index
      %48 = vector.load %arg4[%c0_26, %c0_27] : memref<128x128xbf16, #tpu.memory_space<vmem>>, vector<128x128xbf16>
      %cst_28 = arith.constant dense<0.000000e+00> : vector<128x128xf32>
      %49 = tpu.matmul %47, %48, %cst_28 {dimension_numbers = #tpu.dot_dimension_numbers<[1], [0], [0], [1], [0, 0, 1, 1], [], []>} : vector<128x128xbf16>, vector<128x128xbf16>, vector<128x128xf32> -> vector<128x128xf32>
      %c0_29 = arith.constant 0 : index
      %c0_30 = arith.constant 0 : index
      %50 = vector.load %arg5[%c0_29, %c0_30] : memref<128x128xbf16, #tpu.memory_space<vmem>>, vector<128x128xbf16>
      %cst_31 = arith.constant dense<0.000000e+00> : vector<128x128xf32>
      %51 = tpu.matmul %47, %50, %cst_31 {dimension_numbers = #tpu.dot_dimension_numbers<[1], [0], [0], [1], [0, 0, 1, 1], [], []>} : vector<128x128xbf16>, vector<128x128xbf16>, vector<128x128xf32> -> vector<128x128xf32>
      %52 = vector.extract_strided_slice %49 {offsets = [0, 0], sizes = [128, 32], strides = [1, 1]} : vector<128x128xf32> to vector<128x32xf32>
      %53 = vector.extract_strided_slice %49 {offsets = [0, 32], sizes = [128, 32], strides = [1, 1]} : vector<128x128xf32> to vector<128x32xf32>
      %54 = vector.extract_strided_slice %49 {offsets = [0, 64], sizes = [128, 32], strides = [1, 1]} : vector<128x128xf32> to vector<128x32xf32>
      %55 = vector.extract_strided_slice %49 {offsets = [0, 96], sizes = [128, 32], strides = [1, 1]} : vector<128x128xf32> to vector<128x32xf32>
      %56 = vector.shape_cast %52 : vector<128x32xf32> to vector<1x128x32xf32>
      %57 = vector.shape_cast %53 : vector<128x32xf32> to vector<1x128x32xf32>
      %58 = vector.shape_cast %54 : vector<128x32xf32> to vector<1x128x32xf32>
      %59 = vector.shape_cast %55 : vector<128x32xf32> to vector<1x128x32xf32>
      %60 = tpu.concatenate %56, %57, %58, %59 in 0 : vector<1x128x32xf32>, vector<1x128x32xf32>, vector<1x128x32xf32>, vector<1x128x32xf32> -> vector<4x128x32xf32>
      %61 = arith.truncf %60 : vector<4x128x32xf32> to vector<4x128x32xbf16>
      %c0_32 = arith.constant 0 : index
      %c0_33 = arith.constant 0 : index
      %c0_34 = arith.constant 0 : index
      %62 = vector.load %arg8[%c0_32, %c0_33, %c0_34] : memref<4x128x32xbf16, #tpu.memory_space<vmem>>, vector<4x128x32xbf16>
      tpu.vector_store %arg8[%c0_32, %c0_33, %c0_34], %61 {strides = array<i32>} : memref<4x128x32xbf16, #tpu.memory_space<vmem>>, vector<4x128x32xbf16>,
      %63 = vector.extract_strided_slice %51 {offsets = [0, 0], sizes = [128, 32], strides = [1, 1]} : vector<128x128xf32> to vector<128x32xf32>
      %64 = vector.extract_strided_slice %51 {offsets = [0, 32], sizes = [128, 32], strides = [1, 1]} : vector<128x128xf32> to vector<128x32xf32>
      %65 = vector.extract_strided_slice %51 {offsets = [0, 64], sizes = [128, 32], strides = [1, 1]} : vector<128x128xf32> to vector<128x32xf32>
      %66 = vector.extract_strided_slice %51 {offsets = [0, 96], sizes = [128, 32], strides = [1, 1]} : vector<128x128xf32> to vector<128x32xf32>
      %67 = vector.shape_cast %63 : vector<128x32xf32> to vector<1x128x32xf32>
      %68 = vector.shape_cast %64 : vector<128x32xf32> to vector<1x128x32xf32>
      %69 = vector.shape_cast %65 : vector<128x32xf32> to vector<1x128x32xf32>
      %70 = vector.shape_cast %66 : vector<128x32xf32> to vector<1x128x32xf32>
      %71 = tpu.concatenate %67, %68, %69, %70 in 0 : vector<1x128x32xf32>, vector<1x128x32xf32>, vector<1x128x32xf32>, vector<1x128x32xf32> -> vector<4x128x32xf32>
      %72 = arith.truncf %71 : vector<4x128x32xf32> to vector<4x128x32xbf16>
      %c0_35 = arith.constant 0 : index
      %c0_36 = arith.constant 0 : index
      %c0_37 = arith.constant 0 : index
      %73 = vector.load %arg9[%c0_35, %c0_36, %c0_37] : memref<4x128x32xbf16, #tpu.memory_space<vmem>>, vector<4x128x32xbf16>
      tpu.vector_store %arg9[%c0_35, %c0_36, %c0_37], %72 {strides = array<i32>} : memref<4x128x32xbf16, #tpu.memory_space<vmem>>, vector<4x128x32xbf16>,
    } else {
    }
    %c64_i32 = arith.constant 64 : i32
    %3 = arith.muli %arg1, %c64_i32 : i32
    %4 = tpu.assume_multiple %3, 64 : i32
    %c0 = arith.constant 0 : index
    %5 = arith.index_cast %4 : i32 to index
    %c0_1 = arith.constant 0 : index
    %6 = vector.load %arg2[%c0, %5, %c0_1] : memref<1x128x128xf32, #tpu.memory_space<vmem>>, vector<1x64x128xf32>
    %7 = vector.shape_cast %6 : vector<1x64x128xf32> to vector<64x128xf32>
    %8 = arith.truncf %7 : vector<64x128xf32> to vector<64x128xbf16>
    %c0_2 = arith.constant 0 : index
    %c0_3 = arith.constant 0 : index
    %9 = vector.load %arg3[%c0_2, %c0_3] : memref<128x128xbf16, #tpu.memory_space<vmem>>, vector<128x128xbf16>
    %cst = arith.constant dense<0.000000e+00> : vector<64x128xf32>
    %10 = tpu.matmul %8, %9, %cst {dimension_numbers = #tpu.dot_dimension_numbers<[1], [0], [0], [1], [0, 0, 1, 1], [], []>} : vector<64x128xbf16>, vector<128x128xbf16>, vector<64x128xf32> -> vector<64x128xf32>
    %cst_4 = arith.constant 0.176776692 : f32
    %11 = vector.broadcast %cst_4 : f32 to vector<64x128xf32>
    %12 = arith.mulf %10, %11 : vector<64x128xf32>
    %13 = vector.extract_strided_slice %12 {offsets = [0, 0], sizes = [64, 32], strides = [1, 1]} : vector<64x128xf32> to vector<64x32xf32>
    %14 = vector.extract_strided_slice %12 {offsets = [0, 32], sizes = [64, 32], strides = [1, 1]} : vector<64x128xf32> to vector<64x32xf32>
    %15 = vector.extract_strided_slice %12 {offsets = [0, 64], sizes = [64, 32], strides = [1, 1]} : vector<64x128xf32> to vector<64x32xf32>
    %16 = vector.extract_strided_slice %12 {offsets = [0, 96], sizes = [64, 32], strides = [1, 1]} : vector<64x128xf32> to vector<64x32xf32>
    %17 = vector.shape_cast %13 : vector<64x32xf32> to vector<1x64x32xf32>
    %18 = vector.shape_cast %14 : vector<64x32xf32> to vector<1x64x32xf32>
    %19 = vector.shape_cast %15 : vector<64x32xf32> to vector<1x64x32xf32>
    %20 = vector.shape_cast %16 : vector<64x32xf32> to vector<1x64x32xf32>
    %21 = tpu.concatenate %17, %18, %19, %20 in 0 : vector<1x64x32xf32>, vector<1x64x32xf32>, vector<1x64x32xf32>, vector<1x64x32xf32> -> vector<4x64x32xf32>
    %22 = arith.truncf %21 : vector<4x64x32xf32> to vector<4x64x32xbf16>
    %c0_5 = arith.constant 0 : index
    %c0_6 = arith.constant 0 : index
    %c0_7 = arith.constant 0 : index
    %23 = vector.load %arg8[%c0_5, %c0_6, %c0_7] : memref<4x128x32xbf16, #tpu.memory_space<vmem>>, vector<4x128x32xbf16>
    "tpu.trace_start"() <{level = 10 : i32, message = "hqd,hkd->hqk"}> : () -> ()
    %cst_8 = arith.constant dense<0.000000e+00> : vector<4x64x128xf32>
    %24 = tpu.matmul %22, %23, %cst_8 {dimension_numbers = #tpu.dot_dimension_numbers<[2], [2], [1], [1], [0, 0, 0, 1, 1, 1], [0], [0]>} : vector<4x64x32xbf16>, vector<4x128x32xbf16>, vector<4x64x128xf32> -> vector<4x64x128xf32>
    "tpu.trace_stop"() : () -> ()
    %cst_9 = arith.constant dense<0xFF800000> : vector<4x64xf32>
    %25 = vector.multi_reduction <maximumf>, %24, %cst_9 [2] : vector<4x64x128xf32> to vector<4x64xf32>
    %26 = vector.shape_cast %25 : vector<4x64xf32> to vector<4x64x1xf32>
    %27 = vector.broadcast %26 : vector<4x64x1xf32> to vector<4x64x128xf32>
    %28 = arith.subf %24, %27 : vector<4x64x128xf32>
    %29 = math.exp %28 : vector<4x64x128xf32>
    %cst_10 = arith.constant dense<0.000000e+00> : vector<4x64xf32>
    %30 = vector.multi_reduction <add>, %29, %cst_10 [2] : vector<4x64x128xf32> to vector<4x64xf32>
    %31 = vector.shape_cast %30 : vector<4x64xf32> to vector<4x64x1xf32>
    %32 = tpu.reciprocal %31 {approx = true} : vector<4x64x1xf32> -> vector<4x64x1xf32>
    %33 = vector.broadcast %32 : vector<4x64x1xf32> to vector<4x64x128xf32>
    %34 = arith.mulf %29, %33 : vector<4x64x128xf32>
    %35 = arith.truncf %34 : vector<4x64x128xf32> to vector<4x64x128xbf16>
    %c0_11 = arith.constant 0 : index
    %c0_12 = arith.constant 0 : index
    %c0_13 = arith.constant 0 : index
    %36 = vector.load %arg9[%c0_11, %c0_12, %c0_13] : memref<4x128x32xbf16, #tpu.memory_space<vmem>>, vector<4x128x32xbf16>
    "tpu.trace_start"() <{level = 10 : i32, message = "hqk,hkd->hqd"}> : () -> ()
    %cst_14 = arith.constant dense<0.000000e+00> : vector<4x64x32xf32>
    %37 = tpu.matmul %35, %36, %cst_14 {dimension_numbers = #tpu.dot_dimension_numbers<[2], [1], [1], [2], [0, 0, 0, 1, 1, 2], [0], [0]>} : vector<4x64x128xbf16>, vector<4x128x32xbf16>, vector<4x64x32xf32> -> vector<4x64x32xf32>
    "tpu.trace_stop"() : () -> ()
    %38 = arith.truncf %37 : vector<4x64x32xf32> to vector<4x64x32xbf16>
    %c0_15 = arith.constant 0 : index
    %c0_16 = arith.constant 0 : index
    %c0_17 = arith.constant 0 : index
    %39 = vector.load %arg6[%c0_15, %c0_16, %c0_17] : memref<4x32x128xbf16, #tpu.memory_space<vmem>>, vector<4x32x128xbf16>
    "tpu.trace_start"() <{level = 10 : i32, message = "hqd,hdc->hqc"}> : () -> ()
    %cst_18 = arith.constant dense<0.000000e+00> : vector<4x64x128xf32>
    %40 = tpu.matmul %38, %39, %cst_18 {dimension_numbers = #tpu.dot_dimension_numbers<[2], [1], [1], [2], [0, 0, 0, 1, 1, 2], [0], [0]>} : vector<4x64x32xbf16>, vector<4x32x128xbf16>, vector<4x64x128xf32> -> vector<4x64x128xf32>
    "tpu.trace_stop"() : () -> ()
    %cst_19 = arith.constant dense<0.000000e+00> : vector<64x128xf32>
    %41 = vector.multi_reduction <add>, %40, %cst_19 [0] : vector<4x64x128xf32> to vector<64x128xf32>
    %c0_20 = arith.constant 0 : index
    %c0_21 = arith.constant 0 : index
    %c0_22 = arith.constant 0 : index
    %42 = vector.load %arg7[%c0_20, %c0_21, %c0_22] : memref<1x64x128xf32, #tpu.memory_space<vmem>>, vector<1x64x128xf32>
    %43 = vector.shape_cast %42 : vector<1x64x128xf32> to vector<64x128xf32>
    %44 = vector.shape_cast %41 : vector<64x128xf32> to vector<1x64x128xf32>
    tpu.vector_store %arg7[%c0_20, %c0_21, %c0_22], %44 {strides = array<i32>} : memref<1x64x128xf32, #tpu.memory_space<vmem>>, vector<1x64x128xf32>,
    return
  }
  func.func @transform_0(%arg0: i32, %arg1: i32) -> (i32, i32, i32) {
    %c0_i32 = arith.constant 0 : i32
    %c0_i32_0 = arith.constant 0 : i32
    %c0_i32_1 = arith.constant 0 : i32
    return %arg0, %c0_i32, %c0_i32_0 : i32, i32, i32
  }
  func.func @transform_1(%arg0: i32, %arg1: i32) -> (i32, i32) {
    %c0_i32 = arith.constant 0 : i32
    %c0_i32_0 = arith.constant 0 : i32
    %c0_i32_1 = arith.constant 0 : i32
    return %c0_i32, %c0_i32_0 : i32, i32
  }
  func.func @transform_2(%arg0: i32, %arg1: i32) -> (i32, i32) {
    %c0_i32 = arith.constant 0 : i32
    %c0_i32_0 = arith.constant 0 : i32
    %c0_i32_1 = arith.constant 0 : i32
    return %c0_i32, %c0_i32_0 : i32, i32
  }
  func.func @transform_3(%arg0: i32, %arg1: i32) -> (i32, i32) {
    %c0_i32 = arith.constant 0 : i32
    %c0_i32_0 = arith.constant 0 : i32
    %c0_i32_1 = arith.constant 0 : i32
    return %c0_i32, %c0_i32_0 : i32, i32
  }
  func.func @transform_4(%arg0: i32, %arg1: i32) -> (i32, i32, i32) {
    %c0_i32 = arith.constant 0 : i32
    %c0_i32_0 = arith.constant 0 : i32
    %c0_i32_1 = arith.constant 0 : i32
    %c0_i32_2 = arith.constant 0 : i32
    return %c0_i32, %c0_i32_0, %c0_i32_1 : i32, i32, i32
  }
  func.func @transform_5(%arg0: i32, %arg1: i32) -> (i32, i32, i32) {
    %c0_i32 = arith.constant 0 : i32
    %c0_i32_0 = arith.constant 0 : i32
    return %arg0, %arg1, %c0_i32 : i32, i32, i32
  }
}

</mosaic_0001>

<bundles_post_ra>
// kernel: tpu_custom_call.1
= control target key start
LH: loop header
LB: loop body
LE: loop exit
PB: predicated region body
PF: predicated region fallthrough
CT: control target
= control target key end

     0   :  { %s5411_s0 = inlined_call_operand.hbm [shape: f32[2,128,128], index: 0, kind: input, shape index: {}]   ;;  %s5412_s1 = inlined_call_operand.hbm [shape: bf16[128,128], index: 1, kind: input, shape index: {}]   ;;  %s5413_s2 = inlined_call_operand.hbm [shape: bf16[128,128], index: 2, kind: input, shape index: {}]   ;;  %s5414_s3 = inlined_call_operand.hbm [shape: bf16[128,128], index: 3, kind: input, shape index: {}]   ;;  %s5415_s4 = inlined_call_operand.hbm [shape: bf16[4,32,128], index: 4, kind: input, shape index: {}]   ;;  %s5416_s5 = inlined_call_operand.hbm [shape: f32[2,128,128], index: 5, kind: output, shape index: {}]  }
   0x1   :  { %5428 = sst [smem:[#allocation23_spill]] %s5412_s1 }
   0x2   :  { %5429 = sst [smem:[#allocation24_spill]] %s5413_s2 }
   0x3   :  { %5430 = sst [smem:[#allocation25_spill]] %s5416_s5 }
   0x4   :  { %10 = vsyncpa [#allocation5], 0 }
   0x5   :  { %12 = vsyncpa [#allocation5 + $0x1], 0 }
   0x6   :  { %13 = vsyncpa [#allocation8], 0 }
   0x7   :  { %14 = vsyncpa [#allocation11], 0 }
   0x8   :  { %15 = vsyncpa [#allocation6], 0 }
   0x9   :  { %17 = vsyncpa [#allocation6 + $0x1], 0  ;;  %s4535_s18 = smov 0   ;;  %s4537_s19 = smov 0  }
   0xa   :  { %s4539_s20 = smov 0   ;;  %s4541_s21 = smov 0  }
   0xb   :  { %s4543_s22 = smov 0   ;;  %s4545_s23 = smov 0  }
   0xc   :  { %s4547_s24 = smov 0   ;;  %s4549_s25 = smov 0  }
   0xd   :  { %s4551_s26 = smov 0   ;;  %s4553_s27 = smov 0  }
   0xe   :  { %s4555_s28 = smov 0  }
   0xf LB: > { %5431 = sst [smem:[#allocation18_spill]] %s4445_s18  ;;  %s2959_s29 = sadd.s32 4294967295, %s4485_s28   ;;  %s4485_s28 = sphi %s4555_s28, %s23_s28   ;;  %s4481_s27 = sphi %s4553_s27, %s5468_s27   ;;  %s4477_s26 = sphi %s4551_s26, %s5467_s26   ;;  %s4473_s25 = sphi %s4549_s25, %s5466_s25   ;;  %s4469_s24 = sphi %s4547_s24, %s5465_s24   ;;  %s4465_s23 = sphi %s4545_s23, %s5464_s23   ;;  %s4461_s22 = sphi %s4543_s22, %s5463_s22   ;;  %s4457_s21 = sphi %s4541_s21, %s5462_s21   ;;  %s4453_s20 = sphi %s4539_s20, %s5461_s20   ;;  %s4449_s19 = sphi %s4537_s19, %s5460_s19   ;;  %s4445_s18 = sphi %s4535_s18, %s5459_s18  }
  0x10   : > { %5432 = sst [smem:[#allocation19_spill]] %s4469_s24  ;;  %s2960_s30 = sadd.s32 4294967294, %s4485_s28  }
  0x11   : > { %5433 = sst [smem:[#allocation20_spill]] %s4473_s25  ;;  %p55_p0 = scmp.ne.s32.totalorder %s4461_s22, %s4457_s21 }
  0x12   : > { %p4591_p1 = scmp.eq.s32.totalorder %s2959_s29, 0  ;;  %p164_p2 = scmp.ne.s32.totalorder %s4453_s20, %s4449_s19 }
  0x13   : > { %p165_p3 = scmp.eq.s32.totalorder %s2959_s29, 3  ;;  %p170_p5 = scmp.ne.s32.totalorder %s4449_s19, %s4445_s18 }
  0x14   : > { %s5434_s6 = scalar_select %p4591_p1, 1, 0 }
  0x15   : > { %p4599_p4 = por %p4591_p1, %p55_p0  ;;  %p4605_p6 = por %p165_p3, %p164_p2 }
  0x16   : > { %p171_p7 = scmp.eq.s32.totalorder %s2960_s30, 3  ;;  %p2961_p8 = scmp.ge.s32.totalorder %s4485_s28, 1 }
  0x17   : > { %s5435_s7 = scalar_select %p4599_p4, 1, 0 }
  0x18   : > { %s5436_s8 = scalar_select %p4605_p6, 1, 0 }
  0x19   : > { %p178_p9 = scmp.lt.s32.totalorder %s4485_s28, 5  ;;  %p4611_p10 = por %p171_p7, %p170_p5 }
  0x1a   : > { %5437 = sst [smem:[#allocation21_spill]] %s5436_s8  ;;  %s4487_s11 = smov [#allocation7]  }
  0x1b   : > { %s5438_s9 = scalar_select %p4611_p10, 1, 0 }
  0x1c   : > { %p4615_p11 = pnand %p2961_p8, %p178_p9  ;;  %s190_s12 = sshll.u32 %s4487_s11, 4  ;;  %s191_s12 = int_to_ptr.vmem [resolvable:$true] %s190_s12 }
  0x1d   : > { %5439 = sst [smem:[#allocation22_spill]] %s5438_s9  ;;  %s4488_s14 = smov [#allocation10]  }
  0x1e   : > { %s5440_s10 = scalar_select %p4615_p11, 1, 0 }
  0x1f   : > { %p3618_p12 = pneg %p4615_p11  ;;  %s216_s15 = sshll.u32 %s4488_s14, 4  ;;  %s4627_s15 = int_to_ptr.vmem [resolvable:$true] %s216_s15 }
  0x20   : > { %s5442_s1 = sld [smem:[#allocation23_spill]] }
  0x21   : > { %p4623_p13 = pnand %p3618_p12, %p4591_p1 }
  0x23   : > { %p4637_p2 = pneg %p4623_p13 }
  0x26   : > { %s4213_s21 = scalar_lea.hbm %s5442_s1, 1024 }
  0x27   : > { %p4214_p0 = scmp.ne.s32.totalorder %s5442_s1, %s4213_s21  ;;  %p4220_p7 = scmp.lt.u32.totalorder %s4213_s21, %s5442_s1 }
  0x29   : > { %p4216_p3 = pnand %p4637_p2, %p4214_p0 }
  0x2b   : > { %p4217_p5 = pneg %p4216_p3 }
  0x2d   : > { %p4222_p8 = pnand %p4220_p7, %p4217_p5 }
  0x2f   : > { %4225 = shalt.err (!%p4222_p8)
}
  0x30   : > { %s4226_s16 = scalar_lea.vmem %s191_s12, 1024  ;;  %p4234_p6 = scmp.lt.s32.totalorder %s191_s12, %s191_s12 }
  0x31   : > { %p4227_p9 = scmp.ne.s32.totalorder %s191_s12, %s4226_s16  ;;  %p4235_p1 = scmp.lt.s32.totalorder %s4226_s16, %s4226_s16 }
  0x33   : > { %p4229_p12 = pnand %p4227_p9, %p4637_p2  ;;  %p4236_p4 = por %p4235_p1, %p4234_p6 }
  0x35   : > { %p4230_p10 = pneg %p4229_p12 }
  0x37   : > { %p4237_p11 = pnand %p4236_p4, %p4230_p10 }
  0x39   : > { %4240 = shalt.err (!%p4237_p11)
}
  0x3a   : > { %s4489_s17 = smov 64   ;;  %s4490_s29 = smov 4  }
  0x3b   : > { %3621 = dma.hbm_to_vmem [thread:$0]  (!%p4623_p13), %s5442_s1, 1024, %s191_s12, [#allocation8], %s4489_s17, %s4489_s17, %s4490_s29  }
  0x3c   : > { %s4241_s18 = scalar_lea.hbm %s5414_s3, 1024 }
  0x3d   : > { %p4242_p1 = scmp.ne.s32.totalorder %s5414_s3, %s4241_s18  ;;  %p4248_p10 = scmp.lt.u32.totalorder %s4241_s18, %s5414_s3 }
  0x3f   : > { %p4244_p4 = pnand %p4242_p1, %p4637_p2 }
  0x41   : > { %p4245_p6 = pneg %p4244_p4 }
  0x43   : > { %p4250_p11 = pnand %p4248_p10, %p4245_p6 }
  0x45   : > { %4253 = shalt.err (!%p4250_p11)
}
  0x46   : > { %s4254_s12 = scalar_lea.vmem %s4627_s15, 1024  ;;  %p4262_p7 = scmp.lt.s32.totalorder %s4627_s15, %s4627_s15 }
  0x47   : > { %p4255_p0 = scmp.ne.s32.totalorder %s4627_s15, %s4254_s12  ;;  %p4263_p8 = scmp.lt.s32.totalorder %s4254_s12, %s4254_s12 }
  0x49   : > { %p4257_p3 = pnand %p4255_p0, %p4637_p2  ;;  %p4264_p9 = por %p4263_p8, %p4262_p7 }
  0x4b   : > { %p4258_p5 = pneg %p4257_p3 }
  0x4d   : > { %p4265_p12 = pnand %p4264_p9, %p4258_p5 }
  0x4f   : > { %4268 = shalt.err (!%p4265_p12)
}
  0x50   : > { %3627 = dma.hbm_to_vmem [thread:$0]  (!%p4623_p13), %s5414_s3, 1024, %s4627_s15, [#allocation11], %s4489_s17, %s4489_s17, %s4490_s29  }
  0x51   : > { %s4491_s25 = smov [#allocation9]   ;;  %s4492_s9 = smov [#allocation12]  }
  0x52   : > { %s203_s8 = sshll.u32 %s4491_s25, 4  ;;  %s229_s21 = sshll.u32 %s4492_s9, 4  ;;  %s204_s8 = int_to_ptr.vmem [resolvable:$true] %s203_s8  ;;  %s230_s21 = int_to_ptr.vmem [resolvable:$true] %s229_s21 }
  0x53   : > { %s5444_s2 = sld [smem:[#allocation24_spill]] }
  0x59   : > { %s4269_s16 = scalar_lea.hbm %s5444_s2, 1024 }
  0x5a   : > { %p4270_p1 = scmp.ne.s32.totalorder %s5444_s2, %s4269_s16  ;;  %p4276_p10 = scmp.lt.u32.totalorder %s4269_s16, %s5444_s2 }
  0x5c   : > { %p4272_p4 = pnand %p4270_p1, %p4637_p2 }
  0x5e   : > { %p4273_p6 = pneg %p4272_p4 }
  0x60   : > { %p4278_p11 = pnand %p4276_p10, %p4273_p6 }
  0x62   : > { %4281 = shalt.err (!%p4278_p11)
}
  0x63   : > { %s4282_s15 = scalar_lea.vmem %s204_s8, 1024  ;;  %p4290_p7 = scmp.lt.s32.totalorder %s204_s8, %s204_s8 }
  0x64   : > { %p4283_p0 = scmp.ne.s32.totalorder %s204_s8, %s4282_s15  ;;  %p4291_p8 = scmp.lt.s32.totalorder %s4282_s15, %s4282_s15 }
  0x66   : > { %p4285_p3 = pnand %p4283_p0, %p4637_p2  ;;  %p4292_p9 = por %p4291_p8, %p4290_p7 }
  0x68   : > { %p4286_p5 = pneg %p4285_p3 }
  0x6a   : > { %p4293_p12 = pnand %p4292_p9, %p4286_p5 }
  0x6c   : > { %4296 = shalt.err (!%p4293_p12)
}
  0x6d   : > { %3624 = dma.hbm_to_vmem [thread:$0]  (!%p4623_p13), %s5444_s2, 1024, %s204_s8, [#allocation8], %s4489_s17, %s4489_s17, %s4490_s29  }
  0x6e   : > { %s4297_s9 = scalar_lea.hbm %s5415_s4, 1024 }
  0x6f   : > { %p4298_p1 = scmp.ne.s32.totalorder %s5415_s4, %s4297_s9  ;;  %p4304_p10 = scmp.lt.u32.totalorder %s4297_s9, %s5415_s4 }
  0x71   : > { %p4300_p4 = pnand %p4298_p1, %p4637_p2 }
  0x73   : > { %p4301_p6 = pneg %p4300_p4 }
  0x75   : > { %p4306_p11 = pnand %p4304_p10, %p4301_p6 }
  0x77   : > { %4309 = shalt.err (!%p4306_p11)
}
  0x78   : > { %s4310_s5 = scalar_lea.vmem %s230_s21, 1024  ;;  %p4318_p7 = scmp.lt.s32.totalorder %s230_s21, %s230_s21 }
  0x79   : > { %p4311_p0 = scmp.ne.s32.totalorder %s230_s21, %s4310_s5  ;;  %p4319_p8 = scmp.lt.s32.totalorder %s4310_s5, %s4310_s5 }
  0x7b   : > { %p4313_p3 = pnand %p4311_p0, %p4637_p2  ;;  %p4320_p9 = por %p4319_p8, %p4318_p7 }
  0x7d   : > { %p4314_p5 = pneg %p4313_p3 }
  0x7f   : > { %p4321_p12 = pnand %p4320_p9, %p4314_p5 }
  0x81   : > { %4324 = shalt.err (!%p4321_p12)
}
  0x82   : > { %3630 = dma.hbm_to_vmem [thread:$0]  (!%p4623_p13), %s5415_s4, 1024, %s230_s21, [#allocation11], %s4489_s17, %s4489_s17, %s4490_s29  }
  0x83   : > { %s32_s13 = sadd.s32 1, %s4477_s26  ;;  %s35_s11 = sadd.s32 1, %s4481_s27 }
  0x84   : > { %p33_p2 = scmp.ge.s32.totalorder %s32_s13, 2  ;;  %s42_s1 = sadd.s32 1, %s4465_s23 }
  0x85   : > { %p49_p1 = scmp.ne.s32.totalorder %s4465_s23, %s4461_s22  ;;  %p50_p4 = scmp.eq.s32.totalorder %s4485_s28, 0 }
  0x86   : > { %s5470_s13 = smov (%p33_p2, %s32_s13), 0  ;;  %s5472_s11 = smov (!%p33_p2, %s35_s11), %s4481_s27 }
  0x87   : > { %s150_s24 = ssub.s32 %s4477_s26, %s5470_s13  ;;  %p37_p6 = scmp.ge.s32.totalorder %s5472_s11, 2 }
  0x88   : > { %s154_s18 = sadd.s32 1, %s4453_s20  ;;  %p4736_p10 = por %p50_p4, %p49_p1 }
  0x89   : > { %p3643_p13 = scmp.lt.s32.totalorder %s4485_s28, 4  ;;  %s5474_s11 = smov (%p37_p6, %s5472_s11), 0 }
  0x8a   : > { %s243_s29 = sand.u32 1, %s4465_s23   ;;  %s3049_s21 = sshll.u32 %s4481_s27, 11 }
  0x8b   : > { %s39_s25 = ssub.s32 %s4481_s27, %s5474_s11  ;;  %s2967_s30 = sshll.u32 %s243_s29, 7 }
  0x8c   : > { %p40_p11 = scmp.eq.s32.totalorder %s39_s25, 0  ;;  %s151_s9 = sor.u32 %s150_s24, %s39_s25 }
  0x8d   : > { %p152_p0 = scmp.eq.s32.totalorder %s151_s9, 0  ;;  %s4756_s8 = scalar_lea.hbm %s5411_s0, %s3049_s21 }
  0x8e   : > { %s4748_s14 = scalar_select %p40_p11, %s4465_s23, %s42_s1  }
  0x8f   : > { %s4751_s16 = scalar_select %p152_p0, %s4453_s20, %s154_s18  }
  0x90   : > { %s247_s15 = scalar_lea.vmem [#allocation4], %s2967_s30  ;;  %p4762_p3 = pnand %p3643_p13, %p4736_p10 }
  0x91   : > { %s254_s2 = sshll.u32 %s247_s15, 4  ;;  %s4768_s1 = scalar_lea.sflag [#allocation5], %s243_s29  ;;  %s4766_s2 = int_to_ptr.vmem [resolvable:$true] %s254_s2 }
  0x92   : > { %s4325_s18 = scalar_lea.hbm %s4756_s8, 2048  ;;  %p4327_p7 = pneg %p4762_p3 }
  0x93   : > { %p4326_p5 = scmp.ne.s32.totalorder %s4756_s8, %s4325_s18  ;;  %s4330_s25 = scalar_lea.hbm %s5411_s0, 4096 }
  0x94   : > { %p4331_p12 = scmp.lt.u32.totalorder %s4756_s8, %s5411_s0  ;;  %p4332_p2 = scmp.lt.u32.totalorder %s4330_s25, %s4325_s18 }
  0x95   : > { %p4328_p8 = pnand %p4327_p7, %p4326_p5  ;;  %p4334_p4 = scmp.lt.u32.totalorder %s4325_s18, %s4756_s8 }
  0x96   : > { %p4333_p1 = por %p4332_p2, %p4331_p12 }
  0x97   : > { %p4329_p9 = pneg %p4328_p8 }
  0x98   : > { %p4335_p6 = por %p4334_p4, %p4333_p1 }
  0x9a   : > { %p4336_p10 = pnand %p4335_p6, %p4329_p9 }
  0x9c   : > { %4339 = shalt.err (!%p4336_p10)
}
  0x9d   : > { %s4340_s29 = scalar_lea.vmem %s4766_s2, 2048  ;;  %s4493_s12 = smov [#allocation4]  }
  0x9e   : > { %p4341_p13 = scmp.ne.s32.totalorder %s4766_s2, %s4340_s29  ;;  %s4345_s5 = sshll.u32 %s4493_s12, 4  ;;  %s4346_s5 = int_to_ptr.vmem [resolvable:$false] %s4345_s5 }
  0x9f   : > { %s4347_s15 = scalar_lea.vmem %s4346_s5, 4096  ;;  %p4348_p5 = scmp.lt.s32.totalorder %s4766_s2, %s4346_s5 }
  0xa0   : > { %p4343_p11 = pnand %p4341_p13, %p4327_p7  ;;  %p4349_p8 = scmp.lt.s32.totalorder %s4347_s15, %s4340_s29 }
  0xa2   : > { %p4344_p0 = pneg %p4343_p11  ;;  %p4350_p12 = por %p4349_p8, %p4348_p5 }
  0xa4   : > { %p4351_p2 = pnand %p4350_p12, %p4344_p0 }
  0xa6   : > { %4354 = shalt.err (!%p4351_p2)
}
  0xa7   : > { %s4494_s18 = smov 128   ;;  %s4495_s17 = smov 8  }
  0xa8   : > { %3634 = dma.hbm_to_vmem [thread:$0]  (!%p4762_p3), %s4756_s8, 2048, %s4766_s2, %s4768_s1, %s4494_s18, %s4494_s18, %s4495_s17  }
  0xa9   : > { %p5447_p7 = scmp.ne.s32.totalorder %s5440_s10, 0 }
  0xaa   : > { %s268_s21 = sand.u32 (!%p5447_p7), 1, %s4461_s22   ;;  %p5448_p9 = scmp.ne.s32.totalorder (!%p5447_p7), %s5435_s7, 0 }
  0xab   : > { %266 = sbr.rel (%p5447_p7) target bundleno = 2082 (0x822), region = 40  ;;  %s2971_s25 = sshll.u32 (!%p5447_p7), %s268_s21, 7 }
  0xac   : > { %s269_s9 = scalar_lea.sflag (!%p5447_p7), [#allocation5], %s268_s21  ;;  %s4799_s30 = scalar_lea.vmem (!%p5447_p7), [#allocation4], %s2971_s25 }
  0xb2   : > { %4428 = dma.done.wait (%p5448_p9), %s269_s9, 2048  }
  0xb3   : > { %4430 = vsyncadd (%p5448_p9), %s269_s9, 4294965248  ;;  %p5449_p1 = scmp.ne.s32.totalorder %s5434_s6, 0 }
  0xb5   : > { %4432 = dma.done.wait (%p5449_p1), [#allocation8], 2048  }
  0xb6   : > { %4434 = vsyncadd (%p5449_p1), [#allocation8], 4294965248 }
  0xb7   : > { %4436 = dma.done.wait (%p5449_p1), [#allocation11], 2048  }
  0xb8   : > { %4438 = vsyncadd (%p5449_p1), [#allocation11], 4294965248  ;;  %s312_s2 = sand.u32 1, %s4449_s19   ;;  %s5450_s7 = sld [smem:[#allocation19_spill]] }
  0xb9   : > { %s2976_s10 = sshll.u32 %s312_s2, 6 }
  0xba   : > { %s4816_s8 = scalar_lea.vmem [#allocation13], %s2976_s10 }
  0xbe   : > { %p2977_p3 = scmp.ne.s32.totalorder %s5450_s7, 0 }
  0xbf   : > { %v3993_v0 = vld [vmem:[#allocation9] sm:$0xff] (!%p2977_p3)   ;;  %v3994_v1 = vld [vmem:[#allocation9 + $0x8] sm:$0xff] (!%p2977_p3)   ;;  %v3996_v3 = vld [vmem:[#allocation9 + $0x10] sm:$0xff] (!%p2977_p3)   ;;  %vm859_vm0 = vcmask (!%p2977_p3), 261120   ;;  %s4496_s6 = smov (!%p2977_p3), 64   ;;  %s4497_s24 = smov (!%p2977_p3), 96  }
  0xc0   : > { %320 = sbr.rel (%p2977_p3) target bundleno = 652 (0x28c), region = 64  ;;  %3214 = vmatprep.subr.bf16.mxu0 (!%p2977_p3), %v3993_v0  ;;  %v3995_v2 = vld [vmem:[#allocation10] sm:$0xff] (!%p2977_p3)   ;;  %v3997_v4 = vld [vmem:[#allocation10 + $0x8] sm:$0xff] (!%p2977_p3)   ;;  %v3999_v5 = vld [vmem:[#allocation10 + $0x10] sm:$0xff] (!%p2977_p3)   ;;  %s4498_s1 = smov (!%p2977_p3), 32  }
  0xc1   : > { %3215 = vmatpush3.bf16.msra.mxu0 (!%p2977_p3), %v3993_v0  ;;  %3246 = vmatprep.subr.bf16.mxu1 (!%p2977_p3), %v3995_v2  ;;  %v3998_v6 = vld [vmem:[#allocation9 + $0x18] sm:$0xff] (!%p2977_p3)   ;;  %v4000_v8 = vld [vmem:[#allocation9 + $0x20] sm:$0xff] (!%p2977_p3)   ;;  %v322_v11 = vld [vmem:[%s4799_s30 + $0x8] sm:$0xff] (!%p2977_p3) }
  0xc2   : > { %3216 = vmatprep.subr.bf16.mxu0 (!%p2977_p3), %v3994_v1  ;;  %3247 = vmatpush3.bf16.msra.mxu1 (!%p2977_p3), %v3995_v2  ;;  %v4001_v7 = vld [vmem:[#allocation10 + $0x18] sm:$0xff] (!%p2977_p3)   ;;  %v4003_v9 = vld [vmem:[#allocation10 + $0x20] sm:$0xff] (!%p2977_p3)   ;;  %v4002_v12 = vld [vmem:[#allocation9 + $0x28] sm:$0xff] (!%p2977_p3)  }
  0xc3   : > { %3248 = vmatprep.subr.bf16.mxu1 (!%p2977_p3), %v3997_v4  ;;  %v321_v10 = vld [vmem:[%s4799_s30] sm:$0xff] (!%p2977_p3)  ;;  %v4005_v14 = vld [vmem:[#allocation10 + $0x28] sm:$0xff] (!%p2977_p3)   ;;  %v4004_v15 = vld [vmem:[#allocation9 + $0x30] sm:$0xff] (!%p2977_p3)  }
  0xc4   : > { %v337_v13 = vpack.c.bf16 (!%p2977_p3), %v322_v11, %v321_v10  ;;  %v4007_v16 = vld [vmem:[#allocation10 + $0x30] sm:$0xff] (!%p2977_p3)   ;;  %v4006_v17 = vld [vmem:[#allocation9 + $0x38] sm:$0xff] (!%p2977_p3)   ;;  %v325_v21 = vld [vmem:[%s4799_s30 + $0x20] sm:$0xff] (!%p2977_p3) }
  0xc5   : > { %3217 = vmatpush3.bf16.msra.mxu0 (!%p2977_p3), %v3994_v1  ;;  %v4008_v18 = vld [vmem:[#allocation10 + $0x38] sm:$0xff] (!%p2977_p3)   ;;  %v323_v19 = vld [vmem:[%s4799_s30 + $0x10] sm:$0xff] (!%p2977_p3)  ;;  %v326_v22 = vld [vmem:[%s4799_s30 + $0x28] sm:$0xff] (!%p2977_p3) }
  0xc6   : > { %3218 = vmatprep.subr.bf16.mxu0 (!%p2977_p3), %v3996_v3  ;;  %3249 = vmatpush3.bf16.msra.mxu1 (!%p2977_p3), %v3997_v4  ;;  %v324_v20 = vld [vmem:[%s4799_s30 + $0x18] sm:$0xff] (!%p2977_p3)  ;;  %v339_v24 = vpack.c.bf16 (!%p2977_p3), %v326_v22, %v325_v21  ;;  %v327_v25 = vld [vmem:[%s4799_s30 + $0x30] sm:$0xff] (!%p2977_p3)  ;;  %v329_v27 = vld [vmem:[%s4799_s30 + $0x40] sm:$0xff] (!%p2977_p3) }
  0xc7   : > { %3250 = vmatprep.subr.bf16.mxu1 %v3999_v5  ;;  %3230 = vmatprep.mubr.bf16.mxu0 %v337_v13  ;;  %v338_v23 = vpack.c.bf16 %v324_v20, %v323_v19  ;;  %v328_v26 = vld [vmem:[%s4799_s30 + $0x38] sm:$0xff]  ;;  %v330_v28 = vld [vmem:[%s4799_s30 + $0x48] sm:$0xff]  ;;  %v331_v31 = vld [vmem:[%s4799_s30 + $0x50] sm:$0xff] }
  0xc8   : > { %3262 = vmatprep.mubr.bf16.mxu1 %v337_v13  ;;  %v340_v29 = vpack.c.bf16 %v328_v26, %v327_v25  ;;  %v341_v30 = vpack.c.bf16 %v330_v28, %v329_v27  ;;  %v332_v32 = vld [vmem:[%s4799_s30 + $0x58] sm:$0xff]  ;;  %v333_v33 = vld [vmem:[%s4799_s30 + $0x60] sm:$0xff]  ;;  %v334_v34 = vld [vmem:[%s4799_s30 + $0x68] sm:$0xff] }
  0xc9   : > { %3219 = vmatpush3.bf16.msra.mxu0 %v3996_v3  ;;  %v342_v35 = vpack.c.bf16 %v332_v32, %v331_v31  ;;  %v343_v36 = vpack.c.bf16 %v334_v34, %v333_v33  ;;  %v335_v37 = vld [vmem:[%s4799_s30 + $0x70] sm:$0xff]  ;;  %v336_v38 = vld [vmem:[%s4799_s30 + $0x78] sm:$0xff] }
  0xca   : > { %3220 = vmatprep.subr.bf16.mxu0 %v3998_v6  ;;  %3251 = vmatpush3.bf16.msra.mxu1 %v3999_v5  ;;  %v344_v39 = vpack.c.bf16 %v336_v38, %v335_v37 }
  0xcb   : > { %3252 = vmatprep.subr.bf16.mxu1 %v4001_v7 }
  0xcd   : > { %3221 = vmatpush3.bf16.msra.mxu0 %v3998_v6 }
  0xce   : > { %3222 = vmatprep.subr.bf16.mxu0 %v4000_v8  ;;  %3253 = vmatpush3.bf16.msra.mxu1 %v4001_v7 }
  0xcf   : > { %3254 = vmatprep.subr.bf16.mxu1 %v4003_v9 }
  0xd1   : > { %3223 = vmatpush3.bf16.msra.mxu0 %v4000_v8 }
  0xd2   : > { %3224 = vmatprep.subr.bf16.mxu0 %v4002_v12  ;;  %3255 = vmatpush3.bf16.msra.mxu1 %v4003_v9 }
  0xd3   : > { %3256 = vmatprep.subr.bf16.mxu1 %v4005_v14 }
  0xd5   : > { %3225 = vmatpush3.bf16.msra.mxu0 %v4002_v12 }
  0xd6   : > { %3226 = vmatprep.subr.bf16.mxu0 %v4004_v15  ;;  %3257 = vmatpush3.bf16.msra.mxu1 %v4005_v14 }
  0xd7   : > { %3258 = vmatprep.subr.bf16.mxu1 %v4007_v16 }
  0xd9   : > { %3227 = vmatpush3.bf16.msra.mxu0 %v4004_v15 }
  0xda   : > { %3228 = vmatprep.subr.bf16.mxu0 %v4006_v17  ;;  %3259 = vmatpush3.bf16.msra.mxu1 %v4007_v16 }
  0xdb   : > { %3260 = vmatprep.subr.bf16.mxu1 %v4008_v18 }
  0xdd   : > { %3229 = vmatpush3.bf16.msra.mxu0 %v4006_v17 }
  0xde   : > { %3261 = vmatpush3.bf16.msra.mxu1 %v4008_v18 }
  0xe0   : > { %3231 = vmatmul.mubr.bf16.vlgmr.msra.gmra.mrb[0].mxu0 %v338_v23 }
  0xe1   : > { %3234 = vmatprep.mubr.bf16.mxu0 %v339_v24  ;;  %3263 = vmatmul.mubr.bf16.vlgmr.msra.gmra.mrb[0].mxu1 %v338_v23 }
  0xe2   : > { %3266 = vmatprep.mubr.bf16.mxu1 %v339_v24 }
  0xe8   : > { %3235 = vmatmul.mubr.bf16.gmra.mrb[4].mxu0 %v340_v29 }
  0xe9   : > { %3238 = vmatprep.mubr.bf16.mxu0 %v341_v30  ;;  %3267 = vmatmul.mubr.bf16.gmra.mrb[4].mxu1 %v340_v29 }
  0xea   : > { %3270 = vmatprep.mubr.bf16.mxu1 %v341_v30 }
  0xf0   : > { %3239 = vmatmul.mubr.bf16.gmra.mrb[8].mxu0 %v342_v35 }
  0xf1   : > { %3242 = vmatprep.mubr.bf16.mxu0 %v343_v36  ;;  %3271 = vmatmul.mubr.bf16.gmra.mrb[8].mxu1 %v342_v35 }
  0xf2   : > { %3274 = vmatprep.mubr.bf16.mxu1 %v343_v36 }
  0xf8   : > { %3243 = vmatmul.mubr.bf16.gmra.mrb[12].mxu0 %v344_v39 }
  0xf9   : > { %3275 = vmatmul.mubr.bf16.gmra.mrb[12].mxu1 %v344_v39 }
 0x1b3   : > { %v3232_v40 = vpop.f32.mrb[0].mxu0 }
 0x1b4   : > { %v443_v41 = vpop.f32.mrb[1].mxu0  ;;  %v3264_v43 = vpop.f32.mrb[0].mxu1 }
 0x1b5   : > { %v3233_v42 = vpop.f32.mrb[2].mxu0  ;;  %v604_v47 = vpop.f32.mrb[1].mxu1 }
 0x1b6   : > { %v828_v44 = vpack.c.bf16 %v3233_v42, %v3232_v40  ;;  %v446_v45 = vpop.f32.mrb[3].mxu0  ;;  %v3758_v46 = vpack.i.bf16 %v3233_v42, %v3232_v40  ;;  %v3265_v49 = vpop.f32.mrb[2].mxu1 }
 0x1b7   : > { %v827_v48 = vpack.c.bf16 %v446_v45, %v443_v41  ;;  %v3783_v50 = vpack.i.bf16 %v446_v45, %v443_v41  ;;  %v1053_v51 = vpack.c.bf16 %v3265_v49, %v3264_v43  ;;  %v607_v52 = vpop.f32.mrb[3].mxu1  ;;  %v3768_v53 = vpack.i.bf16 %v3265_v49, %v3264_v43 }
 0x1b8   : > { %861 = vst.msk [vmem:[#allocation2 + $0x8] sm:$0xff] %vm859_vm0, %v828_v44  ;;  %3759 = vrot.lane.b32.xlu1 %v3758_v46, %s4496_s6  ;;  %3754 = vrot.lane.b32.xlu0 %v3758_v46, %s4497_s24  ;;  %v1052_v54 = vpack.c.bf16 %v607_v52, %v604_v47  ;;  %v4839_v55 = vpack.i.bf16 %v607_v52, %v604_v47 }
 0x1b9   : > { %860 = vst.msk [vmem:[#allocation2] sm:$0xff] %vm859_vm0, %v827_v48  ;;  %1085 = vst.msk [vmem:[#allocation3 + $0x8] sm:$0xff] %vm859_vm0, %v1053_v51 }
 0x1ba   : > { %1084 = vst.msk [vmem:[#allocation3] sm:$0xff] %vm859_vm0, %v1052_v54 }
 0x1bb   : > { %v3236_v56 = vpop.f32.mrb[4].mxu0 }
 0x1bc   : > { %3764 = vrot.lane.b32.xlu1 %v3758_v46, %s4498_s1  ;;  %3784 = vrot.lane.b32.xlu0 %v3783_v50, %s4497_s24  ;;  %v459_v57 = vpop.f32.mrb[5].mxu0  ;;  %v3268_v59 = vpop.f32.mrb[4].mxu1 }
 0x1bd   : > { %v3237_v58 = vpop.f32.mrb[6].mxu0  ;;  %v620_v63 = vpop.f32.mrb[5].mxu1 }
 0x1be   : > { %v830_v60 = vpack.c.bf16 %v3237_v58, %v3236_v56  ;;  %v462_v61 = vpop.f32.mrb[7].mxu0  ;;  %v4845_v62 = vpack.i.bf16 %v3237_v58, %v3236_v56  ;;  %v3269_v1 = vpop.f32.mrb[6].mxu1 }
 0x1bf   : > { %v829_v0 = vpack.c.bf16 %v462_v61, %v459_v57  ;;  %v4847_v2 = vpack.i.bf16 %v462_v61, %v459_v57  ;;  %v1055_v3 = vpack.c.bf16 %v3269_v1, %v3268_v59  ;;  %v623_v4 = vpop.f32.mrb[7].mxu1  ;;  %v3828_v5 = vpack.i.bf16 %v3269_v1, %v3268_v59 }
 0x1c0   : > { %3769 = vrot.lane.b32.xlu1 %v3768_v53, %s4497_s24  ;;  %3789 = vrot.lane.b32.xlu0 %v3783_v50, %s4496_s6  ;;  %863 = vst.msk [vmem:[#allocation2 + $0x18] sm:$0xff] %vm859_vm0, %v830_v60  ;;  %v1054_v6 = vpack.c.bf16 %v623_v4, %v620_v63  ;;  %v3858_v7 = vpack.i.bf16 %v623_v4, %v620_v63 }
 0x1c1   : > { %862 = vst.msk [vmem:[#allocation2 + $0x10] sm:$0xff] %vm859_vm0, %v829_v0  ;;  %1087 = vst.msk [vmem:[#allocation3 + $0x18] sm:$0xff] %vm859_vm0, %v1055_v3 }
 0x1c2   : > { %1086 = vst.msk [vmem:[#allocation3 + $0x10] sm:$0xff] %vm859_vm0, %v1054_v6 }
 0x1c3   : > { %v3240_v8 = vpop.f32.mrb[8].mxu0 }
 0x1c4   : > { %3774 = vrot.lane.b32.xlu1 %v3768_v53, %s4496_s6  ;;  %3794 = vrot.lane.b32.xlu0 %v3783_v50, %s4498_s1  ;;  %v475_v9 = vpop.f32.mrb[9].mxu0  ;;  %v3272_v11 = vpop.f32.mrb[8].mxu1 }
 0x1c5   : > { %v3241_v10 = vpop.f32.mrb[10].mxu0  ;;  %v636_v15 = vpop.f32.mrb[9].mxu1 }
 0x1c6   : > { %v832_v12 = vpack.c.bf16 %v3241_v10, %v3240_v8  ;;  %v478_v13 = vpop.f32.mrb[11].mxu0  ;;  %v3873_v14 = vpack.i.bf16 %v3241_v10, %v3240_v8  ;;  %v3273_v18 = vpop.f32.mrb[10].mxu1 }
 0x1c7   : > { %v831_v16 = vpack.c.bf16 %v478_v13, %v475_v9  ;;  %v3903_v17 = vpack.i.bf16 %v478_v13, %v475_v9  ;;  %v1057_v19 = vpack.c.bf16 %v3273_v18, %v3272_v11  ;;  %v639_v20 = vpop.f32.mrb[11].mxu1  ;;  %v3888_v21 = vpack.i.bf16 %v3273_v18, %v3272_v11 }
 0x1c8   : > { %3779 = vrot.lane.b32.xlu1 %v3768_v53, %s4498_s1  ;;  %3799 = vrot.lane.b32.xlu0 %v4839_v55, %s4497_s24  ;;  %865 = vst.msk [vmem:[#allocation2 + $0x28] sm:$0xff] %vm859_vm0, %v832_v12  ;;  %v1056_v22 = vpack.c.bf16 %v639_v20, %v636_v15  ;;  %v3918_v23 = vpack.i.bf16 %v639_v20, %v636_v15 }
 0x1c9   : > { %864 = vst.msk [vmem:[#allocation2 + $0x20] sm:$0xff] %vm859_vm0, %v831_v16  ;;  %1089 = vst.msk [vmem:[#allocation3 + $0x28] sm:$0xff] %vm859_vm0, %v1057_v19 }
 0x1ca   : > { %1088 = vst.msk [vmem:[#allocation3 + $0x20] sm:$0xff] %vm859_vm0, %v1056_v22 }
 0x1cb   : > { %v3244_v24 = vpop.f32.mrb[12].mxu0 }
 0x1cc   : > { %3804 = vrot.lane.b32.xlu0 %v4839_v55, %s4496_s6  ;;  %3814 = vrot.lane.b32.xlu1 %v4845_v62, %s4497_s24  ;;  %v491_v25 = vpop.f32.mrb[13].mxu0  ;;  %v3276_v27 = vpop.f32.mrb[12].mxu1 }
 0x1cd   : > { %v3245_v26 = vpop.f32.mrb[14].mxu0  ;;  %v652_v31 = vpop.f32.mrb[13].mxu1 }
 0x1ce   : > { %v834_v28 = vpack.c.bf16 %v3245_v26, %v3244_v24  ;;  %v494_v29 = vpop.f32.mrb[15].mxu0  ;;  %v3933_v30 = vpack.i.bf16 %v3245_v26, %v3244_v24  ;;  %v3277_v34 = vpop.f32.mrb[14].mxu1 }
 0x1cf   : > { %v3968_v32 = vpack.i.bf16 %v494_v29, %v491_v25  ;;  %v833_v33 = vpack.c.bf16 %v494_v29, %v491_v25  ;;  %v1059_v35 = vpack.c.bf16 %v3277_v34, %v3276_v27  ;;  %v655_v36 = vpop.f32.mrb[15].mxu1  ;;  %v3948_v37 = vpack.i.bf16 %v3277_v34, %v3276_v27 }
 0x1d0   : > { %3809 = vrot.lane.b32.xlu0 %v4839_v55, %s4498_s1  ;;  %3819 = vrot.lane.b32.xlu1 %v4845_v62, %s4496_s6  ;;  %867 = vst.msk [vmem:[#allocation2 + $0x38] sm:$0xff] %vm859_vm0, %v834_v28  ;;  %v3983_v38 = vpack.i.bf16 %v655_v36, %v652_v31  ;;  %v1058_v39 = vpack.c.bf16 %v655_v36, %v652_v31 }
 0x1d1   : > { %866 = vst.msk [vmem:[#allocation2 + $0x30] sm:$0xff] %vm859_vm0, %v833_v33  ;;  %1091 = vst.msk [vmem:[#allocation3 + $0x38] sm:$0xff] %vm859_vm0, %v1059_v35 }
 0x1d2   : > { %1090 = vst.msk [vmem:[#allocation3 + $0x30] sm:$0xff] %vm859_vm0, %v1058_v39 }
 0x1d4   : > { %3824 = vrot.lane.b32.xlu1 %v4845_v62, %s4498_s1  ;;  %3849 = vrot.lane.b32.xlu0 %v4847_v2, %s4496_s6 }
 0x1d8   : > { %3829 = vrot.lane.b32.xlu1 %v3828_v5, %s4497_s24  ;;  %3854 = vrot.lane.b32.xlu0 %v4847_v2, %s4498_s1 }
 0x1dc   : > { %3834 = vrot.lane.b32.xlu1 %v3828_v5, %s4496_s6  ;;  %3859 = vrot.lane.b32.xlu0 %v3858_v7, %s4497_s24 }
 0x1e0   : > { %3839 = vrot.lane.b32.xlu1 %v3828_v5, %s4498_s1  ;;  %3864 = vrot.lane.b32.xlu0 %v3858_v7, %s4496_s6 }
 0x1e4   : > { %3869 = vrot.lane.b32.xlu0 %v3858_v7, %s4498_s1  ;;  %3844 = vrot.lane.b32.xlu1 %v4847_v2, %s4497_s24 }
 0x1e8   : > { %3874 = vrot.lane.b32.xlu1 %v3873_v14, %s4497_s24  ;;  %3904 = vrot.lane.b32.xlu0 %v3903_v17, %s4497_s24 }
 0x1ec   : > { %3879 = vrot.lane.b32.xlu1 %v3873_v14, %s4496_s6  ;;  %3909 = vrot.lane.b32.xlu0 %v3903_v17, %s4496_s6 }
 0x1f0   : > { %3884 = vrot.lane.b32.xlu1 %v3873_v14, %s4498_s1  ;;  %3914 = vrot.lane.b32.xlu0 %v3903_v17, %s4498_s1 }
 0x1f4   : > { %3889 = vrot.lane.b32.xlu1 %v3888_v21, %s4497_s24  ;;  %3919 = vrot.lane.b32.xlu0 %v3918_v23, %s4497_s24 }
 0x1f8   : > { %3894 = vrot.lane.b32.xlu1 %v3888_v21, %s4496_s6  ;;  %3924 = vrot.lane.b32.xlu0 %v3918_v23, %s4496_s6 }
 0x1fc   : > { %3899 = vrot.lane.b32.xlu1 %v3888_v21, %s4498_s1  ;;  %3929 = vrot.lane.b32.xlu0 %v3918_v23, %s4498_s1 }
 0x200   : > { %3934 = vrot.lane.b32.xlu1 %v3933_v30, %s4497_s24  ;;  %3959 = vrot.lane.b32.xlu0 %v3968_v32, %s4497_s24 }
 0x204   : > { %3939 = vrot.lane.b32.xlu1 %v3933_v30, %s4496_s6  ;;  %3964 = vrot.lane.b32.xlu0 %v3968_v32, %s4496_s6 }
 0x208   : > { %3944 = vrot.lane.b32.xlu1 %v3933_v30, %s4498_s1  ;;  %3969 = vrot.lane.b32.xlu0 %v3968_v32, %s4498_s1 }
 0x20c   : > { %3949 = vrot.lane.b32.xlu1 %v3948_v37, %s4497_s24  ;;  %3974 = vrot.lane.b32.xlu0 %v3983_v38, %s4497_s24 }
 0x210   : > { %3954 = vrot.lane.b32.xlu1 %v3948_v37, %s4496_s6  ;;  %3979 = vrot.lane.b32.xlu0 %v3983_v38, %s4496_s6 }
 0x214   : > { %3989 = vrot.lane.b32.xlu1 %v3948_v37, %s4498_s1  ;;  %3984 = vrot.lane.b32.xlu0 %v3983_v38, %s4498_s1 }
 0x22a   : > { %v3760_v40 = vpop.permute.xlu1 %3759  ;;  %v3755_v41 = vpop.permute.xlu0 %3754 }
 0x22b   : > { %v3762_v42 = vunpack.i.h.bf16 %v3760_v40  ;;  %v3761_v43 = vunpack.i.l.bf16 %v3760_v40  ;;  %v3757_v44 = vunpack.i.h.bf16 %v3755_v41  ;;  %v3756_v45 = vunpack.i.l.bf16 %v3755_v41 }
 0x22d   : > { %v844_v46 = vpack.c.bf16 %v3762_v42, %v3761_v43  ;;  %v836_v47 = vpack.c.bf16 %v3757_v44, %v3756_v45 }
 0x22e   : > { %v3765_v48 = vpop.permute.xlu1 %3764  ;;  %v3785_v49 = vpop.permute.xlu0 %3784 }
 0x22f   : > { %877 = vst.msk [vmem:[#allocation2 + $0x88] sm:$0xff] %vm859_vm0, %v844_v46  ;;  %869 = vst.msk [vmem:[#allocation2 + $0x48] sm:$0xff] %vm859_vm0, %v836_v47  ;;  %v3767_v50 = vunpack.i.h.bf16 %v3765_v48  ;;  %v3766_v51 = vunpack.i.l.bf16 %v3765_v48  ;;  %v3787_v52 = vunpack.i.h.bf16 %v3785_v49  ;;  %v3786_v53 = vunpack.i.l.bf16 %v3785_v49 }
 0x231   : > { %v852_v54 = vpack.c.bf16 %v3767_v50, %v3766_v51  ;;  %v835_v55 = vpack.c.bf16 %v3787_v52, %v3786_v53 }
 0x232   : > { %v3770_v56 = vpop.permute.xlu1 %3769  ;;  %v3790_v57 = vpop.permute.xlu0 %3789 }
 0x233   : > { %885 = vst.msk [vmem:[#allocation2 + $0xc8] sm:$0xff] %vm859_vm0, %v852_v54  ;;  %868 = vst.msk [vmem:[#allocation2 + $0x40] sm:$0xff] %vm859_vm0, %v835_v55  ;;  %v3772_v58 = vunpack.i.h.bf16 %v3770_v56  ;;  %v3771_v59 = vunpack.i.l.bf16 %v3770_v56  ;;  %v3792_v60 = vunpack.i.h.bf16 %v3790_v57  ;;  %v3791_v61 = vunpack.i.l.bf16 %v3790_v57 }
 0x235   : > { %v1061_v62 = vpack.c.bf16 %v3772_v58, %v3771_v59  ;;  %v843_v63 = vpack.c.bf16 %v3792_v60, %v3791_v61 }
 0x236   : > { %v3775_v0 = vpop.permute.xlu1 %3774  ;;  %v3795_v1 = vpop.permute.xlu0 %3794 }
 0x237   : > { %1093 = vst.msk [vmem:[#allocation3 + $0x48] sm:$0xff] %vm859_vm0, %v1061_v62  ;;  %876 = vst.msk [vmem:[#allocation2 + $0x80] sm:$0xff] %vm859_vm0, %v843_v63  ;;  %v3777_v2 = vunpack.i.h.bf16 %v3775_v0  ;;  %v3776_v3 = vunpack.i.l.bf16 %v3775_v0  ;;  %v3797_v4 = vunpack.i.h.bf16 %v3795_v1  ;;  %v3796_v5 = vunpack.i.l.bf16 %v3795_v1 }
 0x239   : > { %v1069_v6 = vpack.c.bf16 %v3777_v2, %v3776_v3  ;;  %v851_v7 = vpack.c.bf16 %v3797_v4, %v3796_v5 }
 0x23a   : > { %v3780_v8 = vpop.permute.xlu1 %3779  ;;  %v3800_v9 = vpop.permute.xlu0 %3799 }
 0x23b   : > { %1101 = vst.msk [vmem:[#allocation3 + $0x88] sm:$0xff] %vm859_vm0, %v1069_v6  ;;  %884 = vst.msk [vmem:[#allocation2 + $0xc0] sm:$0xff] %vm859_vm0, %v851_v7  ;;  %v3782_v10 = vunpack.i.h.bf16 %v3780_v8  ;;  %v3781_v11 = vunpack.i.l.bf16 %v3780_v8  ;;  %v3802_v12 = vunpack.i.h.bf16 %v3800_v9  ;;  %v3801_v13 = vunpack.i.l.bf16 %v3800_v9 }
 0x23d   : > { %v1077_v14 = vpack.c.bf16 %v3782_v10, %v3781_v11  ;;  %v1060_v15 = vpack.c.bf16 %v3802_v12, %v3801_v13 }
 0x23e   : > { %v3805_v16 = vpop.permute.xlu0 %3804  ;;  %v3815_v17 = vpop.permute.xlu1 %3814 }
 0x23f   : > { %1109 = vst.msk [vmem:[#allocation3 + $0xc8] sm:$0xff] %vm859_vm0, %v1077_v14  ;;  %1092 = vst.msk [vmem:[#allocation3 + $0x40] sm:$0xff] %vm859_vm0, %v1060_v15  ;;  %v3807_v18 = vunpack.i.h.bf16 %v3805_v16  ;;  %v3806_v19 = vunpack.i.l.bf16 %v3805_v16  ;;  %v3817_v20 = vunpack.i.h.bf16 %v3815_v17  ;;  %v3816_v21 = vunpack.i.l.bf16 %v3815_v17 }
 0x241   : > { %v1068_v22 = vpack.c.bf16 %v3807_v18, %v3806_v19  ;;  %v838_v23 = vpack.c.bf16 %v3817_v20, %v3816_v21 }
 0x242   : > { %v3810_v24 = vpop.permute.xlu0 %3809  ;;  %v3820_v25 = vpop.permute.xlu1 %3819 }
 0x243   : > { %1100 = vst.msk [vmem:[#allocation3 + $0x80] sm:$0xff] %vm859_vm0, %v1068_v22  ;;  %871 = vst.msk [vmem:[#allocation2 + $0x58] sm:$0xff] %vm859_vm0, %v838_v23  ;;  %v3812_v26 = vunpack.i.h.bf16 %v3810_v24  ;;  %v3811_v27 = vunpack.i.l.bf16 %v3810_v24  ;;  %v3822_v28 = vunpack.i.h.bf16 %v3820_v25  ;;  %v3821_v29 = vunpack.i.l.bf16 %v3820_v25 }
 0x245   : > { %v1076_v30 = vpack.c.bf16 %v3812_v26, %v3811_v27  ;;  %v846_v31 = vpack.c.bf16 %v3822_v28, %v3821_v29 }
 0x246   : > { %v3825_v32 = vpop.permute.xlu1 %3824  ;;  %v3850_v33 = vpop.permute.xlu0 %3849 }
 0x247   : > { %1108 = vst.msk [vmem:[#allocation3 + $0xc0] sm:$0xff] %vm859_vm0, %v1076_v30  ;;  %879 = vst.msk [vmem:[#allocation2 + $0x98] sm:$0xff] %vm859_vm0, %v846_v31  ;;  %v3827_v34 = vunpack.i.h.bf16 %v3825_v32  ;;  %v3826_v35 = vunpack.i.l.bf16 %v3825_v32  ;;  %v3852_v36 = vunpack.i.h.bf16 %v3850_v33  ;;  %v3851_v37 = vunpack.i.l.bf16 %v3850_v33 }
 0x249   : > { %v854_v38 = vpack.c.bf16 %v3827_v34, %v3826_v35  ;;  %v845_v39 = vpack.c.bf16 %v3852_v36, %v3851_v37 }
 0x24a   : > { %v3830_v40 = vpop.permute.xlu1 %3829  ;;  %v3855_v41 = vpop.permute.xlu0 %3854 }
 0x24b   : > { %887 = vst.msk [vmem:[#allocation2 + $0xd8] sm:$0xff] %vm859_vm0, %v854_v38  ;;  %878 = vst.msk [vmem:[#allocation2 + $0x90] sm:$0xff] %vm859_vm0, %v845_v39  ;;  %v3832_v42 = vunpack.i.h.bf16 %v3830_v40  ;;  %v3831_v43 = vunpack.i.l.bf16 %v3830_v40  ;;  %v3857_v44 = vunpack.i.h.bf16 %v3855_v41  ;;  %v3856_v45 = vunpack.i.l.bf16 %v3855_v41 }
 0x24d   : > { %v1063_v46 = vpack.c.bf16 %v3832_v42, %v3831_v43  ;;  %v853_v47 = vpack.c.bf16 %v3857_v44, %v3856_v45 }
 0x24e   : > { %v3835_v48 = vpop.permute.xlu1 %3834  ;;  %v3860_v49 = vpop.permute.xlu0 %3859 }
 0x24f   : > { %1095 = vst.msk [vmem:[#allocation3 + $0x58] sm:$0xff] %vm859_vm0, %v1063_v46  ;;  %886 = vst.msk [vmem:[#allocation2 + $0xd0] sm:$0xff] %vm859_vm0, %v853_v47  ;;  %v3837_v50 = vunpack.i.h.bf16 %v3835_v48  ;;  %v3836_v51 = vunpack.i.l.bf16 %v3835_v48  ;;  %v3862_v52 = vunpack.i.h.bf16 %v3860_v49  ;;  %v3861_v53 = vunpack.i.l.bf16 %v3860_v49 }
 0x251   : > { %v1071_v54 = vpack.c.bf16 %v3837_v50, %v3836_v51  ;;  %v1062_v55 = vpack.c.bf16 %v3862_v52, %v3861_v53 }
 0x252   : > { %v3840_v56 = vpop.permute.xlu1 %3839  ;;  %v3865_v57 = vpop.permute.xlu0 %3864 }
 0x253   : > { %1103 = vst.msk [vmem:[#allocation3 + $0x98] sm:$0xff] %vm859_vm0, %v1071_v54  ;;  %1094 = vst.msk [vmem:[#allocation3 + $0x50] sm:$0xff] %vm859_vm0, %v1062_v55  ;;  %v3842_v58 = vunpack.i.h.bf16 %v3840_v56  ;;  %v3841_v59 = vunpack.i.l.bf16 %v3840_v56  ;;  %v3867_v60 = vunpack.i.h.bf16 %v3865_v57  ;;  %v3866_v61 = vunpack.i.l.bf16 %v3865_v57 }
 0x255   : > { %v1079_v62 = vpack.c.bf16 %v3842_v58, %v3841_v59  ;;  %v1070_v63 = vpack.c.bf16 %v3867_v60, %v3866_v61 }
 0x256   : > { %v3870_v0 = vpop.permute.xlu0 %3869  ;;  %v3845_v1 = vpop.permute.xlu1 %3844 }
 0x257   : > { %1111 = vst.msk [vmem:[#allocation3 + $0xd8] sm:$0xff] %vm859_vm0, %v1079_v62  ;;  %1102 = vst.msk [vmem:[#allocation3 + $0x90] sm:$0xff] %vm859_vm0, %v1070_v63  ;;  %v3872_v2 = vunpack.i.h.bf16 %v3870_v0  ;;  %v3871_v3 = vunpack.i.l.bf16 %v3870_v0  ;;  %v3847_v4 = vunpack.i.h.bf16 %v3845_v1  ;;  %v3846_v5 = vunpack.i.l.bf16 %v3845_v1 }
 0x259   : > { %v1078_v6 = vpack.c.bf16 %v3872_v2, %v3871_v3  ;;  %v837_v7 = vpack.c.bf16 %v3847_v4, %v3846_v5 }
 0x25a   : > { %v3875_v8 = vpop.permute.xlu1 %3874  ;;  %v3905_v9 = vpop.permute.xlu0 %3904 }
 0x25b   : > { %1110 = vst.msk [vmem:[#allocation3 + $0xd0] sm:$0xff] %vm859_vm0, %v1078_v6  ;;  %870 = vst.msk [vmem:[#allocation2 + $0x50] sm:$0xff] %vm859_vm0, %v837_v7  ;;  %v3877_v10 = vunpack.i.h.bf16 %v3875_v8  ;;  %v3876_v11 = vunpack.i.l.bf16 %v3875_v8  ;;  %v3907_v12 = vunpack.i.h.bf16 %v3905_v9  ;;  %v3906_v13 = vunpack.i.l.bf16 %v3905_v9 }
 0x25d   : > { %v840_v14 = vpack.c.bf16 %v3877_v10, %v3876_v11  ;;  %v839_v15 = vpack.c.bf16 %v3907_v12, %v3906_v13 }
 0x25e   : > { %v3880_v16 = vpop.permute.xlu1 %3879  ;;  %v3910_v17 = vpop.permute.xlu0 %3909 }
 0x25f   : > { %873 = vst.msk [vmem:[#allocation2 + $0x68] sm:$0xff] %vm859_vm0, %v840_v14  ;;  %872 = vst.msk [vmem:[#allocation2 + $0x60] sm:$0xff] %vm859_vm0, %v839_v15  ;;  %v3882_v18 = vunpack.i.h.bf16 %v3880_v16  ;;  %v3881_v19 = vunpack.i.l.bf16 %v3880_v16  ;;  %v3912_v20 = vunpack.i.h.bf16 %v3910_v17  ;;  %v3911_v21 = vunpack.i.l.bf16 %v3910_v17 }
 0x261   : > { %v848_v22 = vpack.c.bf16 %v3882_v18, %v3881_v19  ;;  %v847_v23 = vpack.c.bf16 %v3912_v20, %v3911_v21 }
 0x262   : > { %v3885_v24 = vpop.permute.xlu1 %3884  ;;  %v3915_v25 = vpop.permute.xlu0 %3914 }
 0x263   : > { %881 = vst.msk [vmem:[#allocation2 + $0xa8] sm:$0xff] %vm859_vm0, %v848_v22  ;;  %880 = vst.msk [vmem:[#allocation2 + $0xa0] sm:$0xff] %vm859_vm0, %v847_v23  ;;  %v3887_v26 = vunpack.i.h.bf16 %v3885_v24  ;;  %v3886_v27 = vunpack.i.l.bf16 %v3885_v24  ;;  %v3917_v28 = vunpack.i.h.bf16 %v3915_v25  ;;  %v3916_v29 = vunpack.i.l.bf16 %v3915_v25 }
 0x265   : > { %v856_v30 = vpack.c.bf16 %v3887_v26, %v3886_v27  ;;  %v855_v31 = vpack.c.bf16 %v3917_v28, %v3916_v29 }
 0x266   : > { %v3890_v32 = vpop.permute.xlu1 %3889  ;;  %v3920_v33 = vpop.permute.xlu0 %3919 }
 0x267   : > { %889 = vst.msk [vmem:[#allocation2 + $0xe8] sm:$0xff] %vm859_vm0, %v856_v30  ;;  %888 = vst.msk [vmem:[#allocation2 + $0xe0] sm:$0xff] %vm859_vm0, %v855_v31  ;;  %v3892_v34 = vunpack.i.h.bf16 %v3890_v32  ;;  %v3891_v35 = vunpack.i.l.bf16 %v3890_v32  ;;  %v3922_v36 = vunpack.i.h.bf16 %v3920_v33  ;;  %v3921_v37 = vunpack.i.l.bf16 %v3920_v33 }
 0x269   : > { %v1065_v38 = vpack.c.bf16 %v3892_v34, %v3891_v35  ;;  %v1064_v39 = vpack.c.bf16 %v3922_v36, %v3921_v37 }
 0x26a   : > { %v3895_v40 = vpop.permute.xlu1 %3894  ;;  %v3925_v41 = vpop.permute.xlu0 %3924 }
 0x26b   : > { %1097 = vst.msk [vmem:[#allocation3 + $0x68] sm:$0xff] %vm859_vm0, %v1065_v38  ;;  %1096 = vst.msk [vmem:[#allocation3 + $0x60] sm:$0xff] %vm859_vm0, %v1064_v39  ;;  %v3897_v42 = vunpack.i.h.bf16 %v3895_v40  ;;  %v3896_v43 = vunpack.i.l.bf16 %v3895_v40  ;;  %v3927_v44 = vunpack.i.h.bf16 %v3925_v41  ;;  %v3926_v45 = vunpack.i.l.bf16 %v3925_v41 }
 0x26d   : > { %v1073_v46 = vpack.c.bf16 %v3897_v42, %v3896_v43  ;;  %v1072_v47 = vpack.c.bf16 %v3927_v44, %v3926_v45 }
 0x26e   : > { %v3900_v48 = vpop.permute.xlu1 %3899  ;;  %v3930_v49 = vpop.permute.xlu0 %3929 }
 0x26f   : > { %1105 = vst.msk [vmem:[#allocation3 + $0xa8] sm:$0xff] %vm859_vm0, %v1073_v46  ;;  %1104 = vst.msk [vmem:[#allocation3 + $0xa0] sm:$0xff] %vm859_vm0, %v1072_v47  ;;  %v3902_v50 = vunpack.i.h.bf16 %v3900_v48  ;;  %v3901_v51 = vunpack.i.l.bf16 %v3900_v48  ;;  %v3932_v52 = vunpack.i.h.bf16 %v3930_v49  ;;  %v3931_v53 = vunpack.i.l.bf16 %v3930_v49 }
 0x271   : > { %v1081_v54 = vpack.c.bf16 %v3902_v50, %v3901_v51  ;;  %v1080_v55 = vpack.c.bf16 %v3932_v52, %v3931_v53 }
 0x272   : > { %v3935_v56 = vpop.permute.xlu1 %3934  ;;  %v3960_v57 = vpop.permute.xlu0 %3959 }
 0x273   : > { %1113 = vst.msk [vmem:[#allocation3 + $0xe8] sm:$0xff] %vm859_vm0, %v1081_v54  ;;  %1112 = vst.msk [vmem:[#allocation3 + $0xe0] sm:$0xff] %vm859_vm0, %v1080_v55  ;;  %v3937_v58 = vunpack.i.h.bf16 %v3935_v56  ;;  %v3936_v59 = vunpack.i.l.bf16 %v3935_v56  ;;  %v3962_v60 = vunpack.i.h.bf16 %v3960_v57  ;;  %v3961_v61 = vunpack.i.l.bf16 %v3960_v57 }
 0x275   : > { %v842_v62 = vpack.c.bf16 %v3937_v58, %v3936_v59  ;;  %v841_v63 = vpack.c.bf16 %v3962_v60, %v3961_v61 }
 0x276   : > { %v3940_v0 = vpop.permute.xlu1 %3939  ;;  %v3965_v1 = vpop.permute.xlu0 %3964 }
 0x277   : > { %875 = vst.msk [vmem:[#allocation2 + $0x78] sm:$0xff] %vm859_vm0, %v842_v62  ;;  %874 = vst.msk [vmem:[#allocation2 + $0x70] sm:$0xff] %vm859_vm0, %v841_v63  ;;  %v3942_v2 = vunpack.i.h.bf16 %v3940_v0  ;;  %v3941_v3 = vunpack.i.l.bf16 %v3940_v0  ;;  %v3967_v4 = vunpack.i.h.bf16 %v3965_v1  ;;  %v3966_v5 = vunpack.i.l.bf16 %v3965_v1 }
 0x279   : > { %v850_v6 = vpack.c.bf16 %v3942_v2, %v3941_v3  ;;  %v849_v7 = vpack.c.bf16 %v3967_v4, %v3966_v5 }
 0x27a   : > { %v3945_v8 = vpop.permute.xlu1 %3944  ;;  %v3970_v9 = vpop.permute.xlu0 %3969 }
 0x27b   : > { %883 = vst.msk [vmem:[#allocation2 + $0xb8] sm:$0xff] %vm859_vm0, %v850_v6  ;;  %882 = vst.msk [vmem:[#allocation2 + $0xb0] sm:$0xff] %vm859_vm0, %v849_v7  ;;  %v3947_v10 = vunpack.i.h.bf16 %v3945_v8  ;;  %v3946_v11 = vunpack.i.l.bf16 %v3945_v8  ;;  %v3972_v12 = vunpack.i.h.bf16 %v3970_v9  ;;  %v3971_v13 = vunpack.i.l.bf16 %v3970_v9 }
 0x27d   : > { %v858_v14 = vpack.c.bf16 %v3947_v10, %v3946_v11  ;;  %v857_v15 = vpack.c.bf16 %v3972_v12, %v3971_v13 }
 0x27e   : > { %v3950_v16 = vpop.permute.xlu1 %3949  ;;  %v3975_v17 = vpop.permute.xlu0 %3974 }
 0x27f   : > { %891 = vst.msk [vmem:[#allocation2 + $0xf8] sm:$0xff] %vm859_vm0, %v858_v14  ;;  %890 = vst.msk [vmem:[#allocation2 + $0xf0] sm:$0xff] %vm859_vm0, %v857_v15  ;;  %v3952_v18 = vunpack.i.h.bf16 %v3950_v16  ;;  %v3951_v19 = vunpack.i.l.bf16 %v3950_v16  ;;  %v3977_v20 = vunpack.i.h.bf16 %v3975_v17  ;;  %v3976_v21 = vunpack.i.l.bf16 %v3975_v17 }
 0x281   : > { %v1067_v22 = vpack.c.bf16 %v3952_v18, %v3951_v19  ;;  %v1066_v23 = vpack.c.bf16 %v3977_v20, %v3976_v21 }
 0x282   : > { %v3955_v24 = vpop.permute.xlu1 %3954  ;;  %v3980_v25 = vpop.permute.xlu0 %3979 }
 0x283   : > { %1099 = vst.msk [vmem:[#allocation3 + $0x78] sm:$0xff] %vm859_vm0, %v1067_v22  ;;  %1098 = vst.msk [vmem:[#allocation3 + $0x70] sm:$0xff] %vm859_vm0, %v1066_v23  ;;  %v3957_v26 = vunpack.i.h.bf16 %v3955_v24  ;;  %v3956_v27 = vunpack.i.l.bf16 %v3955_v24  ;;  %v3982_v28 = vunpack.i.h.bf16 %v3980_v25  ;;  %v3981_v29 = vunpack.i.l.bf16 %v3980_v25 }
 0x285   : > { %v1075_v30 = vpack.c.bf16 %v3957_v26, %v3956_v27  ;;  %v1074_v31 = vpack.c.bf16 %v3982_v28, %v3981_v29 }
 0x286   : > { %v3990_v32 = vpop.permute.xlu1 %3989  ;;  %v3985_v33 = vpop.permute.xlu0 %3984 }
 0x287   : > { %1107 = vst.msk [vmem:[#allocation3 + $0xb8] sm:$0xff] %vm859_vm0, %v1075_v30  ;;  %1106 = vst.msk [vmem:[#allocation3 + $0xb0] sm:$0xff] %vm859_vm0, %v1074_v31  ;;  %v3992_v34 = vunpack.i.h.bf16 %v3990_v32  ;;  %v3991_v35 = vunpack.i.l.bf16 %v3990_v32  ;;  %v3987_v36 = vunpack.i.h.bf16 %v3985_v33  ;;  %v3986_v37 = vunpack.i.l.bf16 %v3985_v33 }
 0x289   : > { %v1083_v38 = vpack.c.bf16 %v3992_v34, %v3991_v35  ;;  %v1082_v39 = vpack.c.bf16 %v3987_v36, %v3986_v37 }
 0x28b   : > { %1115 = vst.msk [vmem:[#allocation3 + $0xf8] sm:$0xff] %vm859_vm0, %v1083_v38  ;;  %1114 = vst.msk [vmem:[#allocation3 + $0xf0] sm:$0xff] %vm859_vm0, %v1082_v39 }
 0x28c PF: > { %v4069_v40 = vld [vmem:[#allocation7] sm:$0xff]   ;;  %s5451_s29 = sld [smem:[#allocation19_spill]]  ;;  %v4070_v41 = vld [vmem:[#allocation7 + $0x8] sm:$0xff]   ;;  %v4071_v42 = vld [vmem:[#allocation7 + $0x10] sm:$0xff]   ;;  %vm1395_vm1 = vcmask 261120   ;;  %s4499_s15 = smov 96  }
 0x28d   : > { %3278 = vmatprep.subr.bf16.mxu0 %v4069_v40  ;;  %v4072_v43 = vld [vmem:[#allocation7 + $0x18] sm:$0xff]   ;;  %v1363_v47 = vld [vmem:[#allocation2] sm:$0xff]  ;;  %v1364_v49 = vld [vmem:[#allocation2 + $0x8] sm:$0xff]  ;;  %s4500_s18 = smov 64   ;;  %s4501_s17 = smov 32  }
 0x28e   : > { %3279 = vmatpush3.bf16.msra.mxu0 %v4069_v40  ;;  %v1409_v48 = vsel %vm1395_vm1, %v1363_v47, 0  ;;  %v4073_v50 = vld [vmem:[#allocation7 + $0x20] sm:$0xff]   ;;  %3566 = vmatprep.subr.msk.bf16.mxu1 %vm1395_vm1, %v1363_v47  ;;  %v1412_v51 = vsel %vm1395_vm1, %v1364_v49, 0  ;;  %v4074_v52 = vld [vmem:[#allocation7 + $0x28] sm:$0xff]   ;;  %v1365_v53 = vld [vmem:[#allocation2 + $0x10] sm:$0xff]  ;;  %s5452_s21 = sld [smem:[#allocation20_spill]] }
 0x28f   : > { %3280 = vmatprep.subr.bf16.mxu0 %v4070_v41  ;;  %3303 = vmatpush3.bf16.xpose.msra.mxu1 %v1409_v48  ;;  %v4075_v54 = vld [vmem:[#allocation7 + $0x30] sm:$0xff]   ;;  %v4076_v55 = vld [vmem:[#allocation7 + $0x38] sm:$0xff]   ;;  %v1415_v56 = vsel %vm1395_vm1, %v1365_v53, 0  ;;  %v1367_v3 = vld [vmem:[#allocation2 + $0x20] sm:$0xff]  ;;  %s2832_s7 = sshll.u32 %s4816_s8, 4  ;;  %s5453_s6 = sld [smem:[#allocation21_spill]]  ;;  %s5343_s7 = int_to_ptr.vmem [resolvable:$true] %s2832_s7 }
 0x290   : > { %3567 = vmatprep.subr.msk.bf16.mxu1 %vm1395_vm1, %v1364_v49  ;;  %v1366_v59 = vld [vmem:[#allocation2 + $0x18] sm:$0xff]  ;;  %v1421_v5 = vsel %vm1395_vm1, %v1367_v3, 0  ;;  %v1368_v6 = vld [vmem:[#allocation2 + $0x28] sm:$0xff]  ;;  %v1369_v8 = vld [vmem:[#allocation2 + $0x30] sm:$0xff] }
 0x291   : > { %v1418_v0 = vsel %vm1395_vm1, %v1366_v59, 0  ;;  %v1424_v7 = vsel %vm1395_vm1, %v1368_v6, 0  ;;  %v1427_v9 = vsel %vm1395_vm1, %v1369_v8, 0  ;;  %v1370_v10 = vld [vmem:[#allocation2 + $0x38] sm:$0xff]  ;;  %v1371_v12 = vld [vmem:[#allocation2 + $0x40] sm:$0xff]  ;;  %v1372_v13 = vld [vmem:[#allocation2 + $0x48] sm:$0xff] }
 0x292   : > { %s2994_s12 = sshll.u32 %s5451_s29, 6  ;;  %3281 = vmatpush3.bf16.msra.mxu0 %v4070_v41  ;;  %v1430_v11 = vsel %vm1395_vm1, %v1370_v10, 0  ;;  %v1379_v14 = vld [vmem:[#allocation2 + $0x80] sm:$0xff]  ;;  %v1510_v15 = vsel %vm1395_vm1, %v1371_v12, 0  ;;  %v1513_v16 = vsel %vm1395_vm1, %v1372_v13, 0  ;;  %v1373_v17 = vld [vmem:[#allocation2 + $0x50] sm:$0xff] }
 0x293   : > { %s4964_s5 = scalar_lea.vmem %s4799_s30, %s2994_s12 [#allocation4]  ;;  %3282 = vmatprep.subr.bf16.mxu0 %v4071_v42  ;;  %v1516_v18 = vsel %vm1395_vm1, %v1373_v17, 0  ;;  %v1374_v19 = vld [vmem:[#allocation2 + $0x58] sm:$0xff]  ;;  %v1375_v21 = vld [vmem:[#allocation2 + $0x60] sm:$0xff]  ;;  %v1376_v23 = vld [vmem:[#allocation2 + $0x68] sm:$0xff]  ;;  %s3044_s25 = sshll.u32 %s5451_s29, 3 }
 0x294   : > { %v1118_v44 = vld [vmem:[%s4964_s5] sm:$0xff]  ;;  %v1119_v45 = vld [vmem:[%s4964_s5 + $0x8] sm:$0xff]  ;;  %v1120_v57 = vld [vmem:[%s4964_s5 + $0x10] sm:$0xff]  ;;  %v1519_v20 = vsel %vm1395_vm1, %v1374_v19, 0  ;;  %v1522_v22 = vsel %vm1395_vm1, %v1375_v21, 0  ;;  %v1525_v24 = vsel %vm1395_vm1, %v1376_v23, 0 }
 0x295   : > { %v1126_v46 = vpack.c.bf16 %v1119_v45, %v1118_v44  ;;  %v1121_v58 = vld [vmem:[%s4964_s5 + $0x18] sm:$0xff]  ;;  %v1122_v60 = vld [vmem:[%s4964_s5 + $0x20] sm:$0xff]  ;;  %v1123_v61 = vld [vmem:[%s4964_s5 + $0x28] sm:$0xff]  ;;  %s3045_s9 = sshll.u32 %s5452_s21, 4  ;;  %s5454_s29 = sld [smem:[#allocation25_spill]] }
 0x296   : > { %3283 = vmatpush3.bf16.msra.mxu0 %v4071_v42  ;;  %v1127_v62 = vpack.c.bf16 %v1121_v58, %v1120_v57  ;;  %v1128_v63 = vpack.c.bf16 %v1123_v61, %v1122_v60  ;;  %v1124_v1 = vld [vmem:[%s4964_s5 + $0x30] sm:$0xff]  ;;  %v1125_v2 = vld [vmem:[%s4964_s5 + $0x38] sm:$0xff]  ;;  %v5007_v31 = vld [vmem:[#allocation2 + $0xc0] sm:$0xff]  ;;  %v1611_v42 = vsel %vm1395_vm1, %v1379_v14, 0  ;;  %s2829_s30 = sadd.s32 %s3045_s9, %s3044_s25  ;;  %s5350_s5 = scalar_lea.sflag [#allocation6], %s312_s2 }
 0x297   : > { %3294 = vmatprep.mubr.bf16.mxu0 %v1126_v46  ;;  %3284 = vmatprep.subr.bf16.mxu0 %v4072_v43  ;;  %v1129_v4 = vpack.c.bf16 %v1125_v2, %v1124_v1  ;;  %v1377_v25 = vld [vmem:[#allocation2 + $0x70] sm:$0xff]  ;;  %v1378_v27 = vld [vmem:[#allocation2 + $0x78] sm:$0xff]  ;;  %v1380_v44 = vld [vmem:[#allocation2 + $0x88] sm:$0xff]  ;;  %s3046_s10 = sshll.u32 %s2829_s30, 7  ;;  %p5455_p6 = scmp.ne.s32.totalorder %s5453_s6, 0 }
 0x298   : > { %3305 = vmatpush3.bf16.xpose.msra.mxu1 %v1412_v51  ;;  %v1528_v26 = vsel %vm1395_vm1, %v1377_v25, 0  ;;  %v1531_v28 = vsel %vm1395_vm1, %v1378_v27, 0  ;;  %v1381_v57 = vld [vmem:[#allocation2 + $0x90] sm:$0xff]  ;;  %v1383_v61 = vld [vmem:[#allocation2 + $0xa0] sm:$0xff] }
 0x299   : > { %3568 = vmatprep.subr.msk.bf16.mxu1 %vm1395_vm1, %v1365_v53  ;;  %v1617_v58 = vsel %vm1395_vm1, %v1381_v57, 0  ;;  %v1385_v1 = vld [vmem:[#allocation2 + $0xb0] sm:$0xff] }
 0x29a   : > { %3285 = vmatpush3.bf16.msra.mxu0 %v4072_v43  ;;  %v1629_v2 = vsel %vm1395_vm1, %v1385_v1, 0 }
 0x29b   : > { %3286 = vmatprep.subr.bf16.mxu0 %v4073_v50  ;;  %s5341_s12 = scalar_lea.hbm %s5454_s29, %s3046_s10 }
 0x29e   : > { %3287 = vmatpush3.bf16.msra.mxu0 %v4073_v50 }
 0x29f   : > { %3288 = vmatprep.subr.bf16.mxu0 %v4074_v52 }
 0x2a0   : > { %3307 = vmatpush3.bf16.xpose.msra.mxu1 %v1415_v56  ;;  %v1614_v56 = vsel %vm1395_vm1, %v1380_v44, 0 }
 0x2a1   : > { %3569 = vmatprep.subr.msk.bf16.mxu1 %vm1395_vm1, %v1366_v59  ;;  %v1382_v59 = vld [vmem:[#allocation2 + $0x98] sm:$0xff] }
 0x2a2   : > { %3289 = vmatpush3.bf16.msra.mxu0 %v4074_v52  ;;  %v1620_v60 = vsel %vm1395_vm1, %v1382_v59, 0 }
 0x2a3   : > { %3290 = vmatprep.subr.bf16.mxu0 %v4075_v54 }
 0x2a6   : > { %3291 = vmatpush3.bf16.msra.mxu0 %v4075_v54 }
 0x2a7   : > { %3292 = vmatprep.subr.bf16.mxu0 %v4076_v55 }
 0x2a8   : > { %3309 = vmatpush3.bf16.xpose.msra.mxu1 %v1418_v0 }
 0x2a9   : > { %3570 = vmatprep.subr.msk.bf16.mxu1 %vm1395_vm1, %v1367_v3  ;;  %v1386_v3 = vld [vmem:[#allocation2 + $0xb8] sm:$0xff] }
 0x2aa   : > { %3293 = vmatpush3.bf16.msra.mxu0 %v4076_v55 }
 0x2ab   : > { %3574 = vmatprep.subr.msk.bf16.mxu0 %vm1395_vm1, %v1371_v12 }
 0x2ad   : > { %3295 = vmatmul.mubr.bf16.vlgmr.msra.gmra.mrb[0].mxu0 %v1127_v62  ;;  %v1623_v62 = vsel %vm1395_vm1, %v1383_v61, 0 }
 0x2ae   : > { %3298 = vmatprep.mubr.bf16.mxu0 %v1128_v63  ;;  %v1384_v63 = vld [vmem:[#allocation2 + $0xa8] sm:$0xff] }
 0x2af   : > { %v1626_v0 = vsel %vm1395_vm1, %v1384_v63, 0 }
 0x2b0   : > { %3311 = vmatpush3.bf16.xpose.msra.mxu1 %v1421_v5 }
 0x2b1   : > { %3571 = vmatprep.subr.msk.bf16.mxu1 %vm1395_vm1, %v1368_v6 }
 0x2b3   : > { %3327 = vmatpush3.bf16.xpose.msra.mxu0 %v1510_v15 }
 0x2b4   : > { %3575 = vmatprep.subr.msk.bf16.mxu0 %vm1395_vm1, %v1372_v13  ;;  %v1712_v13 = vsel %vm1395_vm1, %v5007_v31, 0 }
 0x2b5   : > { %3299 = vmatmul.mubr.bf16.gmra.mrb[4].mxu0 %v1129_v4  ;;  %v1632_v4 = vsel %vm1395_vm1, %v1386_v3, 0 }
 0x2b8   : > { %3313 = vmatpush3.bf16.xpose.msra.mxu1 %v1424_v7 }
 0x2b9   : > { %3572 = vmatprep.subr.msk.bf16.mxu1 %vm1395_vm1, %v1369_v8 }
 0x2bb   : > { %3329 = vmatpush3.bf16.xpose.msra.mxu0 %v1513_v16  ;;  %v1388_v16 = vld [vmem:[#allocation2 + $0xc8] sm:$0xff] }
 0x2bc   : > { %3576 = vmatprep.subr.msk.bf16.mxu0 %vm1395_vm1, %v1373_v17 }
 0x2c0   : > { %3315 = vmatpush3.bf16.xpose.msra.mxu1 %v1427_v9 }
 0x2c1   : > { %3573 = vmatprep.subr.msk.bf16.mxu1 %vm1395_vm1, %v1370_v10 }
 0x2c3   : > { %3331 = vmatpush3.bf16.xpose.msra.mxu0 %v1516_v18 }
 0x2c4   : > { %3577 = vmatprep.subr.msk.bf16.mxu0 %vm1395_vm1, %v1374_v19 }
 0x2c8   : > { %3317 = vmatpush3.bf16.xpose.msra.mxu1 %v1430_v11 }
 0x2c9   : > { %3582 = vmatprep.subr.msk.bf16.mxu1 %vm1395_vm1, %v1379_v14 }
 0x2cb   : > { %3333 = vmatpush3.bf16.xpose.msra.mxu0 %v1519_v20 }
 0x2cc   : > { %3578 = vmatprep.subr.msk.bf16.mxu0 %vm1395_vm1, %v1375_v21 }
 0x2d3   : > { %3335 = vmatpush3.bf16.xpose.msra.mxu0 %v1522_v22 }
 0x2d4   : > { %3579 = vmatprep.subr.msk.bf16.mxu0 %vm1395_vm1, %v1376_v23 }
 0x2db   : > { %3337 = vmatpush3.bf16.xpose.msra.mxu0 %v1525_v24 }
 0x2dc   : > { %3580 = vmatprep.subr.msk.bf16.mxu0 %vm1395_vm1, %v1377_v25 }
 0x2e3   : > { %3339 = vmatpush3.bf16.xpose.msra.mxu0 %v1528_v26 }
 0x2e4   : > { %3581 = vmatprep.subr.msk.bf16.mxu0 %vm1395_vm1, %v1378_v27 }
 0x2eb   : > { %3341 = vmatpush3.bf16.xpose.msra.mxu0 %v1531_v28 }
 0x2ec   : > { %3590 = vmatprep.subr.msk.bf16.mxu0 %vm1395_vm1, %v5007_v31 }
 0x380   : > { %v3296_v29 = vpop.f32.mrb[0].mxu0 }
 0x381   : > { %v1228_v30 = vpop.f32.mrb[1].mxu0  ;;  %v1261_v33 = vmul.f32 0.17677669, %v3296_v29 }
 0x382   : > { %v3297_v32 = vpop.f32.mrb[2].mxu0  ;;  %v1259_v36 = vmul.f32 0.17677669, %v1228_v30  ;;  %v1715_v30 = vsel %vm1395_vm1, %v1388_v16, 0 }
 0x383   : > { %v1262_v34 = vmul.f32 0.17677669, %v3297_v32  ;;  %v1231_v35 = vpop.f32.mrb[3].mxu0 }
 0x384   : > { %v1260_v37 = vmul.f32 0.17677669, %v1231_v35 }
 0x385   : > { %v1348_v38 = vpack.c.bf16 %v1262_v34, %v1261_v33  ;;  %v4014_v39 = vpack.i.bf16 %v1262_v34, %v1261_v33  ;;  %v1389_v33 = vld [vmem:[#allocation2 + $0xd0] sm:$0xff] }
 0x386   : > { %v4009_v40 = vpack.i.bf16 %v1260_v37, %v1259_v36  ;;  %v1347_v41 = vpack.c.bf16 %v1260_v37, %v1259_v36 }
 0x388   : > { %4010 = vrot.lane.b32.xlu0 %v4009_v40, %s4499_s15  ;;  %v3300_v43 = vpop.f32.mrb[4].mxu0  ;;  %3318 = vmatprep.mubr.msk.bf16.mxu1 %vm1395_vm1, %v1347_v41 }
 0x389   : > { %v1265_v45 = vmul.f32 0.17677669, %v3300_v43  ;;  %v1244_v46 = vpop.f32.mrb[5].mxu0  ;;  %3319 = vmatmul.mubr.msk.bf16.vlgmr.msra.gmra.mrb[0].mxu1 %vm1395_vm1, %v1348_v38 }
 0x38a   : > { %v1263_v47 = vmul.f32 0.17677669, %v1244_v46  ;;  %v3301_v48 = vpop.f32.mrb[6].mxu0  ;;  %3351 = vmatpush3.bf16.xpose.msra.mxu1 %v1611_v42 }
 0x38b   : > { %v1266_v49 = vmul.f32 0.17677669, %v3301_v48  ;;  %v1247_v50 = vpop.f32.mrb[7].mxu0  ;;  %3583 = vmatprep.subr.msk.bf16.mxu1 %vm1395_vm1, %v1380_v44  ;;  %v1718_v44 = vsel %vm1395_vm1, %v1389_v33, 0  ;;  %v1391_v48 = vld [vmem:[#allocation2 + $0xe0] sm:$0xff] }
 0x38c   : > { %v1264_v51 = vmul.f32 0.17677669, %v1247_v50  ;;  %4015 = vrot.lane.b32.xlu0 %v4014_v39, %s4499_s15  ;;  %v1392_v50 = vld [vmem:[#allocation2 + $0xe8] sm:$0xff] }
 0x38d   : > { %v1350_v52 = vpack.c.bf16 %v1266_v49, %v1265_v45  ;;  %v4024_v53 = vpack.i.bf16 %v1266_v49, %v1265_v45  ;;  %v1390_v45 = vld [vmem:[#allocation2 + $0xd8] sm:$0xff]  ;;  %v1724_v49 = vsel %vm1395_vm1, %v1391_v48, 0 }
 0x38e   : > { %v4019_v54 = vpack.i.bf16 %v1264_v51, %v1263_v47  ;;  %v1349_v55 = vpack.c.bf16 %v1264_v51, %v1263_v47  ;;  %v1721_v47 = vsel %vm1395_vm1, %v1390_v45, 0  ;;  %v1727_v51 = vsel %vm1395_vm1, %v1392_v50, 0 }
 0x390   : > { %4030 = vrot.lane.b32.xlu0 %v4009_v40, %s4500_s18  ;;  %4020 = vrot.lane.b32.xlu1 %v4019_v54, %s4499_s15 }
 0x391   : > { %3322 = vmatprep.mubr.msk.bf16.mxu1 %vm1395_vm1, %v1349_v55 }
 0x392   : > { %3323 = vmatmul.mubr.msk.bf16.gmra.mrb[4].mxu1 %vm1395_vm1, %v1350_v52  ;;  %v1393_v52 = vld [vmem:[#allocation2 + $0xf0] sm:$0xff] }
 0x393   : > { %3353 = vmatpush3.bf16.xpose.msra.mxu1 %v1614_v56 }
 0x394   : > { %4040 = vrot.lane.b32.xlu0 %v4019_v54, %s4500_s18  ;;  %4025 = vrot.lane.b32.xlu1 %v4024_v53, %s4499_s15  ;;  %s4355_s15 = scalar_lea.vmem %s5343_s7, 1024 }
 0x395   : > { %3584 = vmatprep.subr.msk.bf16.mxu1 %vm1395_vm1, %v1381_v57  ;;  %p4356_p4 = scmp.ne.s32.totalorder %s5343_s7, %s4355_s15 }
 0x397   : > { %p4357_p10 = pnand %p4356_p4, %p5455_p6 }
 0x398   : > { %4050 = vrot.lane.b32.xlu0 %v4009_v40, %s4501_s17  ;;  %4035 = vrot.lane.b32.xlu1 %v4014_v39, %s4500_s18 }
 0x399   : > { %p4358_p13 = pneg %p4357_p10 }
 0x39b   : > { %3355 = vmatpush3.bf16.xpose.msra.mxu1 %v1617_v58 }
 0x39c   : > { %4045 = vrot.lane.b32.xlu1 %v4024_v53, %s4500_s18  ;;  %4060 = vrot.lane.b32.xlu0 %v4019_v54, %s4501_s17  ;;  %v1394_v54 = vld [vmem:[#allocation2 + $0xf8] sm:$0xff]  ;;  %s4502_s18 = smov [#allocation13]  }
 0x39d   : > { %3585 = vmatprep.subr.msk.bf16.mxu1 %vm1395_vm1, %v1382_v59  ;;  %v1733_v55 = vsel %vm1395_vm1, %v1394_v54, 0 }
 0x3a0   : > { %4055 = vrot.lane.b32.xlu1 %v4014_v39, %s4501_s17 }
 0x3a3   : > { %3357 = vmatpush3.bf16.xpose.msra.mxu1 %v1620_v60 }
 0x3a4   : > { %4065 = vrot.lane.b32.xlu1 %v4024_v53, %s4501_s17  ;;  %3586 = vmatprep.subr.msk.bf16.mxu1 %vm1395_vm1, %v1383_v61  ;;  %v1730_v53 = vsel %vm1395_vm1, %v1393_v52, 0  ;;  %s4359_s17 = sshll.u32 %s4502_s18, 4  ;;  %s4360_s17 = int_to_ptr.vmem [resolvable:$false] %s4359_s17 }
 0x3a5   : > { %s4361_s21 = scalar_lea.vmem %s4360_s17, 2048  ;;  %p4362_p11 = scmp.lt.s32.totalorder %s5343_s7, %s4360_s17 }
 0x3a6   : > { %p4363_p0 = scmp.lt.s32.totalorder %s4361_s21, %s4355_s15 }
 0x3a8   : > { %p4364_p5 = por %p4363_p0, %p4362_p11 }
 0x3aa   : > { %p4365_p8 = pnand %p4364_p5, %p4358_p13 }
 0x3ab   : > { %3359 = vmatpush3.bf16.xpose.msra.mxu1 %v1623_v62 }
 0x3ac   : > { %3587 = vmatprep.subr.msk.bf16.mxu1 %vm1395_vm1, %v1384_v63 }
 0x3b3   : > { %3361 = vmatpush3.bf16.xpose.msra.mxu1 %v1626_v0 }
 0x3b4   : > { %3588 = vmatprep.subr.msk.bf16.mxu1 %vm1395_vm1, %v1385_v1 }
 0x3bb   : > { %3363 = vmatpush3.bf16.xpose.msra.mxu1 %v1629_v2 }
 0x3bc   : > { %3589 = vmatprep.subr.msk.bf16.mxu1 %vm1395_vm1, %v1386_v3 }
 0x3c3   : > { %3365 = vmatpush3.bf16.xpose.msra.mxu1 %v1632_v4 }
 0x3fa   : > { %v4011_v5 = vpop.permute.xlu0 %4010 }
 0x3fb   : > { %v4013_v6 = vunpack.i.h.bf16 %v4011_v5  ;;  %v4012_v7 = vunpack.i.l.bf16 %v4011_v5 }
 0x3fd   : > { %v1351_v8 = vpack.c.bf16 %v4013_v6, %v4012_v7 }
 0x3fe   : > { %v4016_v9 = vpop.permute.xlu0 %4015 }
 0x3ff   : > { %v4018_v10 = vunpack.i.h.bf16 %v4016_v9  ;;  %v4017_v11 = vunpack.i.l.bf16 %v4016_v9  ;;  %3342 = vmatprep.mubr.msk.bf16.mxu0 %vm1395_vm1, %v1351_v8 }
 0x401   : > { %v1352_v12 = vpack.c.bf16 %v4018_v10, %v4017_v11 }
 0x402   : > { %v4031_v14 = vpop.permute.xlu0 %4030  ;;  %v4021_v15 = vpop.permute.xlu1 %4020 }
 0x403   : > { %v4033_v17 = vunpack.i.h.bf16 %v4031_v14  ;;  %v4032_v18 = vunpack.i.l.bf16 %v4031_v14  ;;  %v4023_v19 = vunpack.i.h.bf16 %v4021_v15  ;;  %v4022_v20 = vunpack.i.l.bf16 %v4021_v15  ;;  %3343 = vmatmul.mubr.msk.bf16.vlgmr.msra.gmra.mrb[8].mxu0 %vm1395_vm1, %v1352_v12 }
 0x404   : > { %3375 = vmatpush3.bf16.xpose.msra.mxu0 %v1712_v13 }
 0x405   : > { %v1355_v21 = vpack.c.bf16 %v4033_v17, %v4032_v18  ;;  %v1353_v22 = vpack.c.bf16 %v4023_v19, %v4022_v20  ;;  %3591 = vmatprep.subr.msk.bf16.mxu0 %vm1395_vm1, %v1388_v16 }
 0x406   : > { %v4041_v23 = vpop.permute.xlu0 %4040  ;;  %v4026_v24 = vpop.permute.xlu1 %4025 }
 0x407   : > { %v4028_v25 = vunpack.i.h.bf16 %v4026_v24  ;;  %v4027_v26 = vunpack.i.l.bf16 %v4026_v24  ;;  %3366 = vmatprep.mubr.msk.bf16.mxu1 %vm1395_vm1, %v1355_v21  ;;  %3346 = vmatprep.mubr.msk.bf16.mxu0 %vm1395_vm1, %v1353_v22  ;;  %v4043_v27 = vunpack.i.h.bf16 %v4041_v23  ;;  %v4042_v28 = vunpack.i.l.bf16 %v4041_v23 }
 0x409   : > { %v1354_v29 = vpack.c.bf16 %v4028_v25, %v4027_v26  ;;  %v1357_v38 = vpack.c.bf16 %v4043_v27, %v4042_v28 }
 0x40a   : > { %v4051_v31 = vpop.permute.xlu0 %4050  ;;  %v4036_v32 = vpop.permute.xlu1 %4035 }
 0x40b   : > { %v4053_v34 = vunpack.i.h.bf16 %v4051_v31  ;;  %v4052_v35 = vunpack.i.l.bf16 %v4051_v31  ;;  %v4038_v36 = vunpack.i.h.bf16 %v4036_v32  ;;  %v4037_v37 = vunpack.i.l.bf16 %v4036_v32  ;;  %3347 = vmatmul.mubr.msk.bf16.gmra.mrb[12].mxu0 %vm1395_vm1, %v1354_v29 }
 0x40c   : > { %3377 = vmatpush3.bf16.xpose.msra.mxu0 %v1715_v30 }
 0x40d   : > { %v1359_v39 = vpack.c.bf16 %v4053_v34, %v4052_v35  ;;  %v1356_v40 = vpack.c.bf16 %v4038_v36, %v4037_v37  ;;  %3592 = vmatprep.subr.msk.bf16.mxu0 %vm1395_vm1, %v1389_v33 }
 0x40e   : > { %v4046_v41 = vpop.permute.xlu1 %4045  ;;  %v4061_v57 = vpop.permute.xlu0 %4060 }
 0x40f   : > { %v4048_v42 = vunpack.i.h.bf16 %v4046_v41  ;;  %v4047_v43 = vunpack.i.l.bf16 %v4046_v41  ;;  %3367 = vmatmul.mubr.msk.bf16.vlgmr.msra.gmra.mrb[8].mxu1 %vm1395_vm1, %v1356_v40  ;;  %3390 = vmatprep.mubr.msk.bf16.mxu0 %vm1395_vm1, %v1359_v39  ;;  %v4063_v60 = vunpack.i.h.bf16 %v4061_v57  ;;  %v4062_v61 = vunpack.i.l.bf16 %v4061_v57 }
 0x410   : > { %3370 = vmatprep.mubr.msk.bf16.mxu1 %vm1395_vm1, %v1357_v38 }
 0x411   : > { %v1358_v46 = vpack.c.bf16 %v4048_v42, %v4047_v43  ;;  %v1361_v63 = vpack.c.bf16 %v4063_v60, %v4062_v61 }
 0x412   : > { %v4056_v56 = vpop.permute.xlu1 %4055 }
 0x413   : > { %v4058_v58 = vunpack.i.h.bf16 %v4056_v56  ;;  %v4057_v59 = vunpack.i.l.bf16 %v4056_v56  ;;  %v2104_v56 = vld [vmem:[#allocation3] sm:$0xff] }
 0x414   : > { %3379 = vmatpush3.bf16.xpose.msra.mxu0 %v1718_v44  ;;  %3398 = vmatprep.subr.bf16.mxu1 %v2104_v56 }
 0x415   : > { %3593 = vmatprep.subr.msk.bf16.mxu0 %vm1395_vm1, %v1390_v45  ;;  %v1360_v62 = vpack.c.bf16 %v4058_v58, %v4057_v59  ;;  %3399 = vmatpush3.bf16.msra.mxu1 %v2104_v56  ;;  %v2105_v59 = vld [vmem:[#allocation3 + $0x8] sm:$0xff] }
 0x416   : > { %v4066_v0 = vpop.permute.xlu1 %4065  ;;  %3400 = vmatprep.subr.bf16.mxu1 %v2105_v59 }
 0x417   : > { %3371 = vmatmul.mubr.msk.bf16.gmra.mrb[12].mxu1 %vm1395_vm1, %v1358_v46  ;;  %v4068_v1 = vunpack.i.h.bf16 %v4066_v0  ;;  %v4067_v2 = vunpack.i.l.bf16 %v4066_v0  ;;  %v2108_v0 = vld [vmem:[#allocation3 + $0x20] sm:$0xff] }
 0x419   : > { %v1362_v3 = vpack.c.bf16 %v4068_v1, %v4067_v2  ;;  %3401 = vmatpush3.bf16.msra.mxu1 %v2105_v59  ;;  %v2109_v1 = vld [vmem:[#allocation3 + $0x28] sm:$0xff]  ;;  %v2110_v2 = vld [vmem:[#allocation3 + $0x30] sm:$0xff] }
 0x41c   : > { %3381 = vmatpush3.bf16.xpose.msra.mxu0 %v1721_v47 }
 0x41d   : > { %3594 = vmatprep.subr.msk.bf16.mxu0 %vm1395_vm1, %v1391_v48 }
 0x424   : > { %3383 = vmatpush3.bf16.xpose.msra.mxu0 %v1724_v49 }
 0x425   : > { %3595 = vmatprep.subr.msk.bf16.mxu0 %vm1395_vm1, %v1392_v50 }
 0x42c   : > { %3385 = vmatpush3.bf16.xpose.msra.mxu0 %v1727_v51 }
 0x42d   : > { %3596 = vmatprep.subr.msk.bf16.mxu0 %vm1395_vm1, %v1393_v52 }
 0x434   : > { %3387 = vmatpush3.bf16.xpose.msra.mxu0 %v1730_v53 }
 0x435   : > { %3597 = vmatprep.subr.msk.bf16.mxu0 %vm1395_vm1, %v1394_v54 }
 0x43c   : > { %3389 = vmatpush3.bf16.xpose.msra.mxu0 %v1733_v55 }
 0x443   : > { %3391 = vmatmul.mubr.msk.bf16.vlgmr.msra.gmra.mrb[16].mxu0 %vm1395_vm1, %v1360_v62  ;;  %v2106_v62 = vld [vmem:[#allocation3 + $0x10] sm:$0xff] }
 0x444   : > { %3394 = vmatprep.mubr.msk.bf16.mxu0 %vm1395_vm1, %v1361_v63  ;;  %3402 = vmatprep.subr.bf16.mxu1 %v2106_v62  ;;  %v2107_v63 = vld [vmem:[#allocation3 + $0x18] sm:$0xff] }
 0x445   : > { %3403 = vmatpush3.bf16.msra.mxu1 %v2106_v62 }
 0x446   : > { %3404 = vmatprep.subr.bf16.mxu1 %v2107_v63 }
 0x449   : > { %3405 = vmatpush3.bf16.msra.mxu1 %v2107_v63 }
 0x44a   : > { %3406 = vmatprep.subr.bf16.mxu1 %v2108_v0 }
 0x44b   : > { %3395 = vmatmul.mubr.msk.bf16.gmra.mrb[20].mxu0 %vm1395_vm1, %v1362_v3  ;;  %v2111_v3 = vld [vmem:[#allocation3 + $0x38] sm:$0xff] }
 0x44d   : > { %3407 = vmatpush3.bf16.msra.mxu1 %v2108_v0 }
 0x44e   : > { %3408 = vmatprep.subr.bf16.mxu1 %v2109_v1 }
 0x451   : > { %3409 = vmatpush3.bf16.msra.mxu1 %v2109_v1 }
 0x452   : > { %3410 = vmatprep.subr.bf16.mxu1 %v2110_v2 }
 0x455   : > { %3411 = vmatpush3.bf16.msra.mxu1 %v2110_v2 }
 0x456   : > { %3412 = vmatprep.subr.bf16.mxu1 %v2111_v3 }
 0x459   : > { %3413 = vmatpush3.bf16.msra.mxu1 %v2111_v3 }
 0x45c   : > { %v5058_v4 = vpop.f32.mrb[0].mxu1 }
 0x45d   : > { %v1466_v5 = vpop.f32.mrb[1].mxu1  ;;  %1804 = vmax.xlane.f32.xlu0 %v5058_v4 }
 0x45e   : > { %v5061_v6 = vpop.f32.mrb[2].mxu1 }
 0x45f   : > { %v1469_v7 = vpop.f32.mrb[3].mxu1 }
 0x460   : > { %1802 = vmax.xlane.f32.xlu1 %v1469_v7 }
 0x461   : > { %1800 = vmax.xlane.f32.xlu0 %v1466_v5 }
 0x465   : > { %v5063_v8 = vpop.f32.mrb[4].mxu1  ;;  %1806 = vmax.xlane.f32.xlu0 %v5061_v6 }
 0x466   : > { %v5066_v9 = vpop.f32.mrb[5].mxu1 }
 0x467   : > { %1808 = vmax.xlane.f32.xlu1 %v5066_v9  ;;  %v5069_v10 = vpop.f32.mrb[6].mxu1 }
 0x468   : > { %v5071_v11 = vpop.f32.mrb[7].mxu1 }
 0x469   : > { %1810 = vmax.xlane.f32.xlu0 %v5071_v11 }
 0x4d6   : > { %v5074_v12 = vpop.f32.mrb[8].mxu0 }
 0x4d7   : > { %v5076_v13 = vpop.f32.mrb[9].mxu0  ;;  %1820 = vmax.xlane.f32.xlu1 %v5074_v12 }
 0x4d8   : > { %v5079_v14 = vpop.f32.mrb[10].mxu0 }
 0x4d9   : > { %v5081_v15 = vpop.f32.mrb[11].mxu0  ;;  %1822 = vmax.xlane.f32.xlu0 %v5079_v14 }
 0x4db   : > { %1816 = vmax.xlane.f32.xlu1 %v5076_v13 }
 0x4dd   : > { %1818 = vmax.xlane.f32.xlu0 %v5081_v15 }
 0x4de   : > { %v5086_v16 = vpop.f32.mrb[12].mxu0 }
 0x4df   : > { %1812 = vmax.xlane.f32.xlu1 %v5063_v8  ;;  %v5089_v17 = vpop.f32.mrb[13].mxu0 }
 0x4e0   : > { %v5091_v18 = vpop.f32.mrb[14].mxu0 }
 0x4e1   : > { %1814 = vmax.xlane.f32.xlu0 %v5069_v10  ;;  %v5094_v19 = vpop.f32.mrb[15].mxu0 }
 0x4e2   : > { %v5096_v20 = vpop.f32.mrb[8].mxu1 }
 0x4e3   : > { %1824 = vmax.xlane.f32.xlu1 %v5089_v17  ;;  %v5099_v21 = vpop.f32.mrb[9].mxu1 }
 0x4e4   : > { %v5101_v22 = vpop.f32.mrb[10].mxu1 }
 0x4e5   : > { %1826 = vmax.xlane.f32.xlu0 %v5094_v19  ;;  %v5104_v23 = vpop.f32.mrb[11].mxu1 }
 0x4e7   : > { %1828 = vmax.xlane.f32.xlu1 %v5086_v16 }
 0x4e9   : > { %1830 = vmax.xlane.f32.xlu0 %v5091_v18 }
 0x4ea   : > { %v5108_v24 = vpop.f32.mrb[12].mxu1  ;;  %v1805_v28 = vpop.xlane.xlu0 %1804 }
 0x4eb   : > { %1832 = vmax.xlane.f32.xlu1 %v5099_v21  ;;  %v5111_v25 = vpop.f32.mrb[13].mxu1  ;;  %v1866_v37 = vsub.f32 %v5058_v4, %v1805_v28  ;;  %v2112_v4 = vld [vmem:[#allocation3 + $0x40] sm:$0xff] }
 0x4ec   : > { %v5113_v26 = vpop.f32.mrb[14].mxu1  ;;  %3422 = vmatprep.subr.bf16.mxu0 %v2112_v4 }
 0x4ed   : > { %1834 = vmax.xlane.f32.xlu0 %v5104_v23  ;;  %v5116_v27 = vpop.f32.mrb[15].mxu1  ;;  %v1803_v30 = vpop.xlane.xlu1 %1802  ;;  %v1900_v44 = vmul.f32 1.442695, %v1866_v37  ;;  %3423 = vmatpush3.bf16.msra.mxu0 %v2112_v4 }
 0x4ee   : > { %v1801_v29 = vpop.xlane.xlu0 %1800  ;;  %v1865_v34 = vsub.f32 %v1469_v7, %v1803_v30 }
 0x4ef   : > { %1836 = vmax.xlane.f32.xlu1 %v5096_v20  ;;  %v1864_v31 = vsub.f32 %v1466_v5, %v1801_v29  ;;  %v2113_v5 = vld [vmem:[#allocation3 + $0x48] sm:$0xff] }
 0x4f0   : > { %v1898_v41 = vmul.f32 1.442695, %v1865_v34  ;;  %3424 = vmatprep.subr.bf16.mxu0 %v2113_v5 }
 0x4f1   : > { %1838 = vmax.xlane.f32.xlu0 %v5101_v22  ;;  %v1896_v38 = vmul.f32 1.442695, %v1864_v31  ;;  %3425 = vmatpush3.bf16.msra.mxu0 %v2113_v5 }
 0x4f2   : > { %v1807_v32 = vpop.xlane.xlu0 %1806 }
 0x4f3   : > { %1840 = vmax.xlane.f32.xlu1 %v5111_v25  ;;  %v1867_v42 = vsub.f32 %v5061_v6, %v1807_v32  ;;  %4085 = vpow2.f32 %v1896_v38  ;;  %v2114_v6 = vld [vmem:[#allocation3 + $0x50] sm:$0xff] }
 0x4f4   : > { %v1809_v40 = vpop.xlane.xlu1 %1808  ;;  %4087 = vpow2.f32 %v1898_v41  ;;  %3426 = vmatprep.subr.bf16.mxu0 %v2114_v6 }
 0x4f5   : > { %1842 = vmax.xlane.f32.xlu0 %v5116_v27  ;;  %v1868_v45 = vsub.f32 %v5066_v9, %v1809_v40  ;;  %v1902_v47 = vmul.f32 1.442695, %v1867_v42  ;;  %4089 = vpow2.f32 %v1900_v44  ;;  %3427 = vmatpush3.bf16.msra.mxu0 %v2114_v6 }
 0x4f6   : > { %v1811_v43 = vpop.xlane.xlu0 %1810 }
 0x4f7   : > { %1844 = vmax.xlane.f32.xlu1 %v5108_v24  ;;  %v1869_v48 = vsub.f32 %v5071_v11, %v1811_v43  ;;  %v1904_v51 = vmul.f32 1.442695, %v1868_v45  ;;  %4091 = vpow2.f32 %v1902_v47 }
 0x4f9   : > { %1846 = vmax.xlane.f32.xlu0 %v5113_v26  ;;  %v1906_v53 = vmul.f32 1.442695, %v1869_v48  ;;  %4093 = vpow2.f32 %v1904_v51 }
 0x4fb   : > { %4095 = vpow2.f32 %v1906_v53 }
 0x4fd   : > { %v5152_v54 = vpop.eup %4085 }
 0x4fe   : > { %v5155_v55 = vpop.eup %4087 }
 0x4ff   : > { %v5158_v57 = vpop.eup %4089 }
 0x501   : > { %v5161_v58 = vpop.eup %4091 }
 0x503   : > { %v5164_v60 = vpop.eup %4093 }
 0x505   : > { %v5167_v61 = vpop.eup %4095 }
 0x516   : > { %v5124_v33 = vpop.f32.mrb[16].mxu0 }
 0x517   : > { %v5126_v35 = vpop.f32.mrb[17].mxu0 }
 0x518   : > { %v5128_v36 = vpop.f32.mrb[18].mxu0  ;;  %1848 = vmax.xlane.f32.xlu1 %v5126_v35 }
 0x519   : > { %v5132_v39 = vpop.f32.mrb[19].mxu0 }
 0x51a   : > { %1850 = vmax.xlane.f32.xlu0 %v5132_v39 }
 0x51c   : > { %1852 = vmax.xlane.f32.xlu1 %v5124_v33 }
 0x51e   : > { %v5138_v46 = vpop.f32.mrb[20].mxu0  ;;  %1854 = vmax.xlane.f32.xlu0 %v5128_v36 }
 0x51f   : > { %v5142_v49 = vpop.f32.mrb[21].mxu0 }
 0x520   : > { %v5144_v50 = vpop.f32.mrb[22].mxu0  ;;  %1856 = vmax.xlane.f32.xlu1 %v5142_v49 }
 0x521   : > { %v5147_v52 = vpop.f32.mrb[23].mxu0 }
 0x522   : > { %1858 = vmax.xlane.f32.xlu0 %v5147_v52 }
 0x524   : > { %1860 = vmax.xlane.f32.xlu1 %v5138_v46 }
 0x526   : > { %1862 = vmax.xlane.f32.xlu0 %v5144_v50 }
 0x528   : > { %1960 = vadd.xlane.f32.xlu1 %v5152_v54 }
 0x52a   : > { %1962 = vadd.xlane.f32.xlu0 %v5155_v55 }
 0x52c   : > { %1964 = vadd.xlane.f32.xlu1 %v5158_v57 }
 0x52e   : > { %1966 = vadd.xlane.f32.xlu0 %v5161_v58 }
 0x530   : > { %1968 = vadd.xlane.f32.xlu1 %v5164_v60 }
 0x532   : > { %1970 = vadd.xlane.f32.xlu0 %v5167_v61 }
 0x564   : > { %v1821_v7 = vpop.xlane.xlu1 %1820 }
 0x565   : > { %v1874_v9 = vsub.f32 %v5074_v12, %v1821_v7 }
 0x566   : > { %v1823_v11 = vpop.xlane.xlu0 %1822 }
 0x567   : > { %v1916_v28 = vmul.f32 1.442695, %v1874_v9  ;;  %v1875_v29 = vsub.f32 %v5079_v14, %v1823_v11 }
 0x568   : > { %v1817_v30 = vpop.xlane.xlu1 %1816 }
 0x569   : > { %4097 = vpow2.f32 %v1916_v28  ;;  %v1918_v31 = vmul.f32 1.442695, %v1875_v29  ;;  %v1872_v32 = vsub.f32 %v5076_v13, %v1817_v30 }
 0x56a   : > { %v1819_v34 = vpop.xlane.xlu0 %1818 }
 0x56b   : > { %4099 = vpow2.f32 %v1918_v31  ;;  %v1912_v37 = vmul.f32 1.442695, %v1872_v32  ;;  %v1873_v38 = vsub.f32 %v5081_v15, %v1819_v34 }
 0x56c   : > { %v1813_v40 = vpop.xlane.xlu1 %1812 }
 0x56d   : > { %4101 = vpow2.f32 %v1912_v37  ;;  %v1914_v41 = vmul.f32 1.442695, %v1873_v38  ;;  %v1870_v42 = vsub.f32 %v5063_v8, %v1813_v40 }
 0x56e   : > { %v1815_v12 = vpop.xlane.xlu0 %1814 }
 0x56f   : > { %4103 = vpow2.f32 %v1914_v41  ;;  %v1908_v43 = vmul.f32 1.442695, %v1870_v42  ;;  %v1871_v14 = vsub.f32 %v5069_v10, %v1815_v12  ;;  %v2115_v12 = vld [vmem:[#allocation3 + $0x58] sm:$0xff] }
 0x570   : > { %v1825_v44 = vpop.xlane.xlu1 %1824  ;;  %3428 = vmatprep.subr.bf16.mxu0 %v2115_v12 }
 0x571   : > { %4105 = vpow2.f32 %v1908_v43  ;;  %v1910_v45 = vmul.f32 1.442695, %v1871_v14  ;;  %v1876_v13 = vsub.f32 %v5089_v17, %v1825_v44  ;;  %3429 = vmatpush3.bf16.msra.mxu0 %v2115_v12 }
 0x572   : > { %v1827_v47 = vpop.xlane.xlu0 %1826 }
 0x573   : > { %v5177_v48 = vpop.eup %4097  ;;  %4107 = vpow2.f32 %v1910_v45  ;;  %v1920_v15 = vmul.f32 1.442695, %v1876_v13  ;;  %v1877_v51 = vsub.f32 %v5094_v19, %v1827_v47  ;;  %v2116_v13 = vld [vmem:[#allocation3 + $0x60] sm:$0xff] }
 0x574   : > { %v1829_v53 = vpop.xlane.xlu1 %1828  ;;  %1980 = vadd.xlane.f32.xlu1 %v5177_v48  ;;  %3430 = vmatprep.subr.bf16.mxu0 %v2116_v13  ;;  %v5227_v47 = vld [vmem:[#allocation3 + $0x80] sm:$0xff] }
 0x575   : > { %v5181_v8 = vpop.eup %4099  ;;  %4109 = vpow2.f32 %v1920_v15  ;;  %v1922_v56 = vmul.f32 1.442695, %v1877_v51  ;;  %v1878_v10 = vsub.f32 %v5086_v16, %v1829_v53  ;;  %3431 = vmatpush3.bf16.msra.mxu0 %v2116_v13  ;;  %3446 = vmatprep.subr.bf16.mxu1 %v5227_v47  ;;  %v2117_v15 = vld [vmem:[#allocation3 + $0x68] sm:$0xff]  ;;  %v2118_v53 = vld [vmem:[#allocation3 + $0x70] sm:$0xff] }
 0x576   : > { %v1831_v59 = vpop.xlane.xlu0 %1830  ;;  %1982 = vadd.xlane.f32.xlu0 %v5181_v8  ;;  %3432 = vmatprep.subr.bf16.mxu0 %v2117_v15 }
 0x577   : > { %v5185_v17 = vpop.eup %4101  ;;  %4111 = vpow2.f32 %v1922_v56  ;;  %v1924_v62 = vmul.f32 1.442695, %v1878_v10  ;;  %v1879_v63 = vsub.f32 %v5091_v18, %v1831_v59  ;;  %v2119_v59 = vld [vmem:[#allocation3 + $0x78] sm:$0xff] }
 0x578   : > { %v1833_v0 = vpop.xlane.xlu1 %1832  ;;  %1976 = vadd.xlane.f32.xlu1 %v5185_v17 }
 0x579   : > { %v5189_v19 = vpop.eup %4103  ;;  %4113 = vpow2.f32 %v1924_v62  ;;  %v1926_v1 = vmul.f32 1.442695, %v1879_v63  ;;  %v1880_v2 = vsub.f32 %v5099_v21, %v1833_v0  ;;  %3433 = vmatpush3.bf16.msra.mxu0 %v2117_v15 }
 0x57a   : > { %v1835_v3 = vpop.xlane.xlu0 %1834  ;;  %1978 = vadd.xlane.f32.xlu0 %v5189_v19  ;;  %3434 = vmatprep.subr.bf16.mxu0 %v2118_v53 }
 0x57b   : > { %v5193_v16 = vpop.eup %4105  ;;  %4115 = vpow2.f32 %v1926_v1  ;;  %v1928_v4 = vmul.f32 1.442695, %v1880_v2  ;;  %v1881_v5 = vsub.f32 %v5104_v23, %v1835_v3 }
 0x57c   : > { %v1837_v6 = vpop.xlane.xlu1 %1836  ;;  %1972 = vadd.xlane.f32.xlu1 %v5193_v16 }
 0x57d   : > { %v5197_v18 = vpop.eup %4107  ;;  %4117 = vpow2.f32 %v1928_v4  ;;  %v1930_v7 = vmul.f32 1.442695, %v1881_v5  ;;  %v1882_v9 = vsub.f32 %v5096_v20, %v1837_v6  ;;  %3435 = vmatpush3.bf16.msra.mxu0 %v2118_v53 }
 0x57e   : > { %v1839_v11 = vpop.xlane.xlu0 %1838  ;;  %1974 = vadd.xlane.f32.xlu0 %v5197_v18  ;;  %3436 = vmatprep.subr.bf16.mxu0 %v2119_v59 }
 0x57f   : > { %v5201_v21 = vpop.eup %4109  ;;  %4119 = vpow2.f32 %v1930_v7  ;;  %v1932_v28 = vmul.f32 1.442695, %v1882_v9  ;;  %v1883_v29 = vsub.f32 %v5101_v22, %v1839_v11 }
 0x580   : > { %1984 = vadd.xlane.f32.xlu1 %v5201_v21  ;;  %v1841_v23 = vpop.xlane.xlu1 %1840 }
 0x581   : > { %v5205_v30 = vpop.eup %4111  ;;  %4121 = vpow2.f32 %v1932_v28  ;;  %v1934_v31 = vmul.f32 1.442695, %v1883_v29  ;;  %v1884_v32 = vsub.f32 %v5111_v25, %v1841_v23  ;;  %3437 = vmatpush3.bf16.msra.mxu0 %v2119_v59 }
 0x582   : > { %1986 = vadd.xlane.f32.xlu0 %v5205_v30  ;;  %v1843_v20 = vpop.xlane.xlu0 %1842 }
 0x583   : > { %v5209_v34 = vpop.eup %4113  ;;  %4123 = vpow2.f32 %v1934_v31  ;;  %v1936_v37 = vmul.f32 1.442695, %v1884_v32  ;;  %v1885_v38 = vsub.f32 %v5116_v27, %v1843_v20 }
 0x584   : > { %1988 = vadd.xlane.f32.xlu1 %v5209_v34  ;;  %v1845_v22 = vpop.xlane.xlu1 %1844 }
 0x585   : > { %v5213_v40 = vpop.eup %4115  ;;  %4125 = vpow2.f32 %v1936_v37  ;;  %v1938_v41 = vmul.f32 1.442695, %v1885_v38  ;;  %v1886_v42 = vsub.f32 %v5108_v24, %v1845_v22  ;;  %v5252_v38 = vld [vmem:[#allocation3 + $0xc0] sm:$0xff] }
 0x586   : > { %1990 = vadd.xlane.f32.xlu0 %v5213_v40  ;;  %v1847_v25 = vpop.xlane.xlu0 %1846  ;;  %3470 = vmatprep.subr.bf16.mxu0 %v5252_v38 }
 0x587   : > { %v5217_v43 = vpop.eup %4117  ;;  %4127 = vpow2.f32 %v1938_v41  ;;  %v1940_v14 = vmul.f32 1.442695, %v1886_v42  ;;  %v1887_v27 = vsub.f32 %v5113_v26, %v1847_v25 }
 0x588   : > { %1992 = vadd.xlane.f32.xlu1 %v5217_v43 }
 0x589   : > { %v5221_v44 = vpop.eup %4119  ;;  %4129 = vpow2.f32 %v1940_v14  ;;  %v1942_v45 = vmul.f32 1.442695, %v1887_v27 }
 0x58a   : > { %1994 = vadd.xlane.f32.xlu0 %v5221_v44 }
 0x58b   : > { %v5224_v24 = vpop.eup %4121  ;;  %4131 = vpow2.f32 %v1942_v45 }
 0x58c   : > { %1996 = vadd.xlane.f32.xlu1 %v5224_v24 }
 0x58d   : > { %v5229_v26 = vpop.eup %4123 }
 0x58e   : > { %1998 = vadd.xlane.f32.xlu0 %v5229_v26 }
 0x58f   : > { %v5233_v51 = vpop.eup %4125 }
 0x590   : > { %2000 = vadd.xlane.f32.xlu1 %v5233_v51 }
 0x591   : > { %v5236_v56 = vpop.eup %4127 }
 0x592   : > { %2002 = vadd.xlane.f32.xlu0 %v5236_v56 }
 0x593   : > { %v5239_v10 = vpop.eup %4129 }
 0x594   : > { %2004 = vadd.xlane.f32.xlu1 %v5239_v10 }
 0x595   : > { %v5242_v62 = vpop.eup %4131 }
 0x596   : > { %2006 = vadd.xlane.f32.xlu0 %v5242_v62 }
 0x5a5   : > { %v1849_v63 = vpop.xlane.xlu1 %1848 }
 0x5a6   : > { %v1888_v0 = vsub.f32 %v5126_v35, %v1849_v63 }
 0x5a7   : > { %v1851_v1 = vpop.xlane.xlu0 %1850 }
 0x5a8   : > { %v1944_v2 = vmul.f32 1.442695, %v1888_v0  ;;  %v1889_v3 = vsub.f32 %v5132_v39, %v1851_v1 }
 0x5a9   : > { %v1853_v4 = vpop.xlane.xlu1 %1852 }
 0x5aa   : > { %4133 = vpow2.f32 %v1944_v2  ;;  %v1946_v5 = vmul.f32 1.442695, %v1889_v3  ;;  %v1890_v6 = vsub.f32 %v5124_v33, %v1853_v4 }
 0x5ab   : > { %v1855_v7 = vpop.xlane.xlu0 %1854 }
 0x5ac   : > { %4135 = vpow2.f32 %v1946_v5  ;;  %v1948_v9 = vmul.f32 1.442695, %v1890_v6  ;;  %v1891_v11 = vsub.f32 %v5128_v36, %v1855_v7 }
 0x5ad   : > { %v1857_v28 = vpop.xlane.xlu1 %1856 }
 0x5ae   : > { %4137 = vpow2.f32 %v1948_v9  ;;  %v1950_v29 = vmul.f32 1.442695, %v1891_v11  ;;  %v1892_v23 = vsub.f32 %v5142_v49, %v1857_v28 }
 0x5af   : > { %v1859_v35 = vpop.xlane.xlu0 %1858 }
 0x5b0   : > { %4139 = vpow2.f32 %v1950_v29  ;;  %v1952_v31 = vmul.f32 1.442695, %v1892_v23  ;;  %v1893_v39 = vsub.f32 %v5147_v52, %v1859_v35  ;;  %v2121_v29 = vld [vmem:[#allocation3 + $0x88] sm:$0xff] }
 0x5b1   : > { %v1861_v32 = vpop.xlane.xlu1 %1860 }
 0x5b2   : > { %4141 = vpow2.f32 %v1952_v31  ;;  %v1954_v20 = vmul.f32 1.442695, %v1893_v39  ;;  %v1894_v33 = vsub.f32 %v5138_v46, %v1861_v32  ;;  %v2125_v31 = vld [vmem:[#allocation3 + $0xa8] sm:$0xff] }
 0x5b3   : > { %v1863_v37 = vpop.xlane.xlu0 %1862 }
 0x5b4   : > { %v5254_v22 = vpop.eup %4133  ;;  %4143 = vpow2.f32 %v1954_v20  ;;  %v1956_v36 = vmul.f32 1.442695, %v1894_v33  ;;  %v1895_v41 = vsub.f32 %v5144_v50, %v1863_v37 }
 0x5b5   : > { %2008 = vadd.xlane.f32.xlu1 %v5254_v22  ;;  %v1961_v49 = vpop.xlane.xlu1 %1960 }
 0x5b6   : > { %v5259_v52 = vpop.eup %4135  ;;  %4145 = vpow2.f32 %v1956_v36  ;;  %v1958_v42 = vmul.f32 1.442695, %v1895_v41 }
 0x5b7   : > { %4147 = vrcp.f32 %v1961_v49  ;;  %2010 = vadd.xlane.f32.xlu0 %v5259_v52  ;;  %v1963_v46 = vpop.xlane.xlu0 %1962 }
 0x5b8   : > { %v5262_v12 = vpop.eup %4137  ;;  %4149 = vpow2.f32 %v1958_v42 }
 0x5b9   : > { %4151 = vrcp.f32 %v1963_v46  ;;  %2012 = vadd.xlane.f32.xlu1 %v5262_v12  ;;  %v1965_v50 = vpop.xlane.xlu1 %1964 }
 0x5ba   : > { %v5265_v25 = vpop.eup %4139  ;;  %4153 = vrcp.f32 %v1965_v50 }
 0x5bb   : > { %2014 = vadd.xlane.f32.xlu0 %v5265_v25  ;;  %v1967_v14 = vpop.xlane.xlu0 %1966 }
 0x5bc   : > { %v5268_v27 = vpop.eup %4141  ;;  %4155 = vrcp.f32 %v1967_v14 }
 0x5bd   : > { %2016 = vadd.xlane.f32.xlu1 %v5268_v27  ;;  %v1969_v45 = vpop.xlane.xlu1 %1968 }
 0x5be   : > { %v5271_v13 = vpop.eup %4143  ;;  %4157 = vrcp.f32 %v1969_v45 }
 0x5bf   : > { %2018 = vadd.xlane.f32.xlu0 %v5271_v13  ;;  %v1971_v15 = vpop.xlane.xlu0 %1970 }
 0x5c0   : > { %v5274_v53 = vpop.eup %4145  ;;  %4159 = vrcp.f32 %v1971_v15 }
 0x5c1   : > { %v4148_v59 = vpop.eup %4147  ;;  %2020 = vadd.xlane.f32.xlu1 %v5274_v53 }
 0x5c2   : > { %v5277_v63 = vpop.eup %4149  ;;  %v2056_v2 = vmul.f32 %v4148_v59, %v5152_v54 }
 0x5c3   : > { %v4152_v0 = vpop.eup %4151  ;;  %2022 = vadd.xlane.f32.xlu0 %v5277_v63 }
 0x5c4   : > { %v4154_v1 = vpop.eup %4153  ;;  %v2057_v3 = vmul.f32 %v4152_v0, %v5155_v55  ;;  %v2122_v55 = vld [vmem:[#allocation3 + $0x90] sm:$0xff] }
 0x5c5   : > { %v2058_v6 = vmul.f32 %v4154_v1, %v5158_v57  ;;  %v2123_v57 = vld [vmem:[#allocation3 + $0x98] sm:$0xff] }
 0x5c6   : > { %v4156_v4 = vpop.eup %4155  ;;  %v2088_v5 = vpack.c.bf16 %v2057_v3, %v2056_v2 }
 0x5c7   : > { %v2059_v7 = vmul.f32 %v4156_v4, %v5161_v58  ;;  %v2124_v58 = vld [vmem:[#allocation3 + $0xa0] sm:$0xff] }
 0x5c8   : > { %v4158_v9 = vpop.eup %4157  ;;  %3414 = vmatprep.mubr.bf16.mxu1 %v2088_v5 }
 0x5c9   : > { %v2089_v11 = vpack.c.bf16 %v2059_v7, %v2058_v6  ;;  %v2060_v23 = vmul.f32 %v4158_v9, %v5164_v60  ;;  %v2126_v60 = vld [vmem:[#allocation3 + $0xb0] sm:$0xff] }
 0x5ca   : > { %v4160_v28 = vpop.eup %4159 }
 0x5cb   : > { %3415 = vmatmul.mubr.bf16.vlgmr.msra.gmra.mrb[16].mxu1 %v2089_v11  ;;  %v2061_v35 = vmul.f32 %v4160_v28, %v5167_v61  ;;  %v2127_v61 = vld [vmem:[#allocation3 + $0xb8] sm:$0xff]  ;;  %v2129_v11 = vld [vmem:[#allocation3 + $0xc8] sm:$0xff] }
 0x5cc   : > { %3447 = vmatpush3.bf16.msra.mxu1 %v5227_v47 }
 0x5cd   : > { %v2090_v54 = vpack.c.bf16 %v2061_v35, %v2060_v23  ;;  %3448 = vmatprep.subr.bf16.mxu1 %v2121_v29 }
 0x5cf   : > { %3418 = vmatprep.mubr.bf16.mxu1 %v2090_v54 }
 0x5d0   : > { %3449 = vmatpush3.bf16.msra.mxu1 %v2121_v29 }
 0x5d1   : > { %3450 = vmatprep.subr.bf16.mxu1 %v2122_v55 }
 0x5d4   : > { %3451 = vmatpush3.bf16.msra.mxu1 %v2122_v55 }
 0x5d5   : > { %3452 = vmatprep.subr.bf16.mxu1 %v2123_v57 }
 0x5d8   : > { %3453 = vmatpush3.bf16.msra.mxu1 %v2123_v57 }
 0x5d9   : > { %3454 = vmatprep.subr.bf16.mxu1 %v2124_v58 }
 0x5dc   : > { %3455 = vmatpush3.bf16.msra.mxu1 %v2124_v58 }
 0x5dd   : > { %3456 = vmatprep.subr.bf16.mxu1 %v2125_v31 }
 0x5e0   : > { %3457 = vmatpush3.bf16.msra.mxu1 %v2125_v31 }
 0x5e1   : > { %3458 = vmatprep.subr.bf16.mxu1 %v2126_v60 }
 0x5e4   : > { %3459 = vmatpush3.bf16.msra.mxu1 %v2126_v60  ;;  %v2131_v60 = vld [vmem:[#allocation3 + $0xd8] sm:$0xff] }
 0x5e5   : > { %3460 = vmatprep.subr.bf16.mxu1 %v2127_v61 }
 0x5e8   : > { %3461 = vmatpush3.bf16.msra.mxu1 %v2127_v61 }
 0x601   : > { %v1981_v47 = vpop.xlane.xlu1 %1980 }
 0x603   : > { %v1983_v39 = vpop.xlane.xlu0 %1982 }
 0x604   : > { %4161 = vrcp.f32 %v1983_v39 }
 0x605   : > { %v1977_v32 = vpop.xlane.xlu1 %1976 }
 0x606   : > { %4163 = vrcp.f32 %v1977_v32 }
 0x607   : > { %4165 = vrcp.f32 %v1981_v47  ;;  %v1979_v20 = vpop.xlane.xlu0 %1978 }
 0x608   : > { %4167 = vrcp.f32 %v1979_v20 }
 0x609   : > { %v1973_v33 = vpop.xlane.xlu1 %1972 }
 0x60a   : > { %4169 = vrcp.f32 %v1973_v33  ;;  %v2132_v33 = vld [vmem:[#allocation3 + $0xe0] sm:$0xff] }
 0x60b   : > { %v1975_v37 = vpop.xlane.xlu0 %1974 }
 0x60c   : > { %4171 = vrcp.f32 %v1975_v37 }
 0x60d   : > { %v1985_v36 = vpop.xlane.xlu1 %1984 }
 0x60e   : > { %4173 = vrcp.f32 %v1985_v36  ;;  %v4162_v41 = vpop.eup %4161 }
 0x60f   : > { %v1987_v49 = vpop.xlane.xlu0 %1986  ;;  %v2067_v45 = vmul.f32 %v4162_v41, %v5181_v8 }
 0x610   : > { %v4164_v42 = vpop.eup %4163  ;;  %4175 = vrcp.f32 %v1987_v49 }
 0x611   : > { %v4166_v46 = vpop.eup %4165  ;;  %v1989_v50 = vpop.xlane.xlu1 %1988  ;;  %v2064_v59 = vmul.f32 %v4164_v42, %v5185_v17  ;;  %v2133_v42 = vld [vmem:[#allocation3 + $0xe8] sm:$0xff] }
 0x612   : > { %v4168_v14 = vpop.eup %4167  ;;  %4177 = vrcp.f32 %v1989_v50  ;;  %v2066_v2 = vmul.f32 %v4166_v46, %v5177_v48 }
 0x613   : > { %v1991_v15 = vpop.xlane.xlu0 %1990  ;;  %v2065_v0 = vmul.f32 %v4168_v14, %v5189_v19 }
 0x614   : > { %v4170_v1 = vpop.eup %4169  ;;  %4179 = vrcp.f32 %v1991_v15  ;;  %v2093_v6 = vpack.c.bf16 %v2067_v45, %v2066_v2  ;;  %v2134_v45 = vld [vmem:[#allocation3 + $0xf0] sm:$0xff] }
 0x615   : > { %v1993_v3 = vpop.xlane.xlu1 %1992  ;;  %v2092_v4 = vpack.c.bf16 %v2065_v0, %v2064_v59  ;;  %v2062_v9 = vmul.f32 %v4170_v1, %v5193_v16  ;;  %v2130_v16 = vld [vmem:[#allocation3 + $0xd0] sm:$0xff]  ;;  %v2135_v1 = vld [vmem:[#allocation3 + $0xf8] sm:$0xff] }
 0x616   : > { %v4172_v5 = vpop.eup %4171  ;;  %4181 = vrcp.f32 %v1993_v3  ;;  %v4077_v3 = vld [vmem:[#allocation12] sm:$0xff]  }
 0x617   : > { %3438 = vmatprep.mubr.bf16.mxu0 %v2092_v4  ;;  %v1995_v7 = vpop.xlane.xlu0 %1994  ;;  %v2063_v8 = vmul.f32 %v4172_v5, %v5197_v18 }
 0x618   : > { %v4174_v28 = vpop.eup %4173  ;;  %4183 = vrcp.f32 %v1995_v7  ;;  %3439 = vmatmul.mubr.bf16.vlgmr.msra.gmra.mrb[24].mxu0 %v2093_v6 }
 0x619   : > { %v1997_v17 = vpop.xlane.xlu1 %1996  ;;  %v2091_v19 = vpack.c.bf16 %v2063_v8, %v2062_v9  ;;  %3471 = vmatpush3.bf16.msra.mxu0 %v5252_v38  ;;  %v2068_v23 = vmul.f32 %v4174_v28, %v5201_v21 }
 0x61a   : > { %v4176_v48 = vpop.eup %4175  ;;  %4185 = vrcp.f32 %v1997_v17  ;;  %3472 = vmatprep.subr.bf16.mxu0 %v2129_v11 }
 0x61b   : > { %3419 = vmatmul.mubr.bf16.gmra.mrb[20].mxu1 %v2091_v19  ;;  %v1999_v29 = vpop.xlane.xlu0 %1998  ;;  %v2069_v35 = vmul.f32 %v4176_v48, %v5205_v30 }
 0x61c   : > { %v4178_v54 = vpop.eup %4177  ;;  %4187 = vrcp.f32 %v1999_v29 }
 0x61d   : > { %v2001_v18 = vpop.xlane.xlu1 %2000  ;;  %v2094_v55 = vpack.c.bf16 %v2069_v35, %v2068_v23  ;;  %3473 = vmatpush3.bf16.msra.mxu0 %v2129_v11  ;;  %v2070_v58 = vmul.f32 %v4178_v54, %v5209_v34  ;;  %v4078_v54 = vld [vmem:[#allocation12 + $0x8] sm:$0xff]  }
 0x61e   : > { %v4180_v57 = vpop.eup %4179  ;;  %4189 = vrcp.f32 %v2001_v18  ;;  %3474 = vmatprep.subr.bf16.mxu0 %v2130_v16 }
 0x61f   : > { %3442 = vmatprep.mubr.bf16.mxu0 %v2094_v55  ;;  %v2003_v38 = vpop.xlane.xlu0 %2002  ;;  %v2071_v31 = vmul.f32 %v4180_v57, %v5213_v40  ;;  %v4079_v40 = vld [vmem:[#allocation12 + $0x10] sm:$0xff]  }
 0x620   : > { %v4182_v61 = vpop.eup %4181  ;;  %4191 = vrcp.f32 %v2003_v38  ;;  %3506 = vmatprep.subr.bf16.mxu1 %v4079_v40 }
 0x621   : > { %v2005_v21 = vpop.xlane.xlu1 %2004  ;;  %v2095_v30 = vpack.c.bf16 %v2071_v31, %v2070_v58  ;;  %3475 = vmatpush3.bf16.msra.mxu0 %v2130_v16  ;;  %v2072_v32 = vmul.f32 %v4182_v61, %v5217_v43  ;;  %v4080_v31 = vld [vmem:[#allocation12 + $0x18] sm:$0xff]  }
 0x622   : > { %v4184_v47 = vpop.eup %4183  ;;  %4193 = vrcp.f32 %v2005_v21  ;;  %3476 = vmatprep.subr.bf16.mxu0 %v2131_v60 }
 0x623   : > { %3443 = vmatmul.mubr.bf16.gmra.mrb[28].mxu0 %v2095_v30  ;;  %v2007_v39 = vpop.xlane.xlu0 %2006  ;;  %v2073_v20 = vmul.f32 %v4184_v47, %v5221_v44 }
 0x624   : > { %v4186_v37 = vpop.eup %4185  ;;  %4195 = vrcp.f32 %v2007_v39 }
 0x625   : > { %v2096_v34 = vpack.c.bf16 %v2073_v20, %v2072_v32  ;;  %3477 = vmatpush3.bf16.msra.mxu0 %v2131_v60  ;;  %v2074_v41 = vmul.f32 %v4186_v37, %v5224_v24  ;;  %v4081_v60 = vld [vmem:[#allocation12 + $0x20] sm:$0xff]  }
 0x626   : > { %v4188_v36 = vpop.eup %4187  ;;  %3478 = vmatprep.subr.bf16.mxu0 %v2132_v33 }
 0x627   : > { %v2075_v49 = vmul.f32 %v4188_v36, %v5229_v26  ;;  %3462 = vmatprep.mubr.bf16.mxu1 %v2096_v34  ;;  %v4082_v36 = vld [vmem:[#allocation12 + $0x28] sm:$0xff]  }
 0x628   : > { %v4190_v46 = vpop.eup %4189 }
 0x629   : > { %v2097_v50 = vpack.c.bf16 %v2075_v49, %v2074_v41  ;;  %3479 = vmatpush3.bf16.msra.mxu0 %v2132_v33  ;;  %v2076_v44 = vmul.f32 %v4190_v46, %v5233_v51  ;;  %v4083_v46 = vld [vmem:[#allocation12 + $0x30] sm:$0xff]  }
 0x62a   : > { %v4192_v43 = vpop.eup %4191  ;;  %3480 = vmatprep.subr.bf16.mxu0 %v2133_v42 }
 0x62b   : > { %3463 = vmatmul.mubr.bf16.vlgmr.msra.gmra.mrb[24].mxu1 %v2097_v50  ;;  %v2077_v14 = vmul.f32 %v4192_v43, %v5236_v56 }
 0x62c   : > { %v4194_v15 = vpop.eup %4193  ;;  %3507 = vmatpush3.bf16.msra.mxu1 %v4079_v40 }
 0x62d   : > { %v2098_v59 = vpack.c.bf16 %v2077_v14, %v2076_v44  ;;  %3481 = vmatpush3.bf16.msra.mxu0 %v2133_v42  ;;  %v2078_v26 = vmul.f32 %v4194_v15, %v5239_v10  ;;  %3508 = vmatprep.subr.bf16.mxu1 %v4080_v31 }
 0x62e   : > { %v4196_v24 = vpop.eup %4195  ;;  %3482 = vmatprep.subr.bf16.mxu0 %v2134_v45 }
 0x62f   : > { %3466 = vmatprep.mubr.bf16.mxu1 %v2098_v59  ;;  %v2079_v0 = vmul.f32 %v4196_v24, %v5242_v62 }
 0x630   : > { %3509 = vmatpush3.bf16.msra.mxu1 %v4080_v31 }
 0x631   : > { %v2099_v2 = vpack.c.bf16 %v2079_v0, %v2078_v26  ;;  %3483 = vmatpush3.bf16.msra.mxu0 %v2134_v45  ;;  %3518 = vmatprep.subr.bf16.mxu1 %v4081_v60 }
 0x632   : > { %3484 = vmatprep.subr.bf16.mxu0 %v2135_v1 }
 0x633   : > { %3467 = vmatmul.mubr.bf16.gmra.mrb[28].mxu1 %v2099_v2 }
 0x635   : > { %3485 = vmatpush3.bf16.msra.mxu0 %v2135_v1 }
 0x636   : > { %3494 = vmatprep.subr.bf16.mxu0 %v4077_v3 }
 0x642   : > { %v2009_v51 = vpop.xlane.xlu1 %2008 }
 0x643   : > { %4197 = vrcp.f32 %v2009_v51 }
 0x644   : > { %v2011_v56 = vpop.xlane.xlu0 %2010 }
 0x645   : > { %4199 = vrcp.f32 %v2011_v56 }
 0x646   : > { %v2013_v4 = vpop.xlane.xlu1 %2012 }
 0x647   : > { %4201 = vrcp.f32 %v2013_v4 }
 0x648   : > { %v2015_v5 = vpop.xlane.xlu0 %2014 }
 0x649   : > { %4203 = vrcp.f32 %v2015_v5 }
 0x64a   : > { %v2017_v6 = vpop.xlane.xlu1 %2016 }
 0x64b   : > { %4205 = vrcp.f32 %v2017_v6 }
 0x64c   : > { %v2019_v10 = vpop.xlane.xlu0 %2018 }
 0x64d   : > { %v4198_v62 = vpop.eup %4197  ;;  %4207 = vrcp.f32 %v2019_v10 }
 0x64e   : > { %v2021_v7 = vpop.xlane.xlu1 %2020  ;;  %v2080_v11 = vmul.f32 %v4198_v62, %v5254_v22 }
 0x64f   : > { %v4200_v9 = vpop.eup %4199  ;;  %4209 = vrcp.f32 %v2021_v7 }
 0x650   : > { %v2023_v8 = vpop.xlane.xlu0 %2022  ;;  %v2081_v28 = vmul.f32 %v4200_v9, %v5259_v52 }
 0x651   : > { %v4202_v17 = vpop.eup %4201  ;;  %4211 = vrcp.f32 %v2023_v8 }
 0x652   : > { %v2100_v19 = vpack.c.bf16 %v2081_v28, %v2080_v11  ;;  %v2082_v29 = vmul.f32 %v4202_v17, %v5262_v12 }
 0x653   : > { %v4204_v48 = vpop.eup %4203 }
 0x654   : > { %v2083_v23 = vmul.f32 %v4204_v48, %v5265_v25  ;;  %3486 = vmatprep.mubr.bf16.mxu0 %v2100_v19 }
 0x655   : > { %v4206_v35 = vpop.eup %4205 }
 0x656   : > { %v2101_v16 = vpack.c.bf16 %v2083_v23, %v2082_v29  ;;  %v2084_v55 = vmul.f32 %v4206_v35, %v5268_v27 }
 0x657   : > { %v4208_v18 = vpop.eup %4207 }
 0x658   : > { %3487 = vmatmul.mubr.bf16.vlgmr.msra.gmra.mrb[32].mxu0 %v2101_v16  ;;  %v2085_v22 = vmul.f32 %v4208_v18, %v5271_v13 }
 0x659   : > { %v4210_v57 = vpop.eup %4209  ;;  %3495 = vmatpush3.bf16.msra.mxu0 %v4077_v3  ;;  %v4084_v3 = vld [vmem:[#allocation12 + $0x38] sm:$0xff]  }
 0x65a   : > { %v2102_v52 = vpack.c.bf16 %v2085_v22, %v2084_v55  ;;  %3496 = vmatprep.subr.bf16.mxu0 %v4078_v54  ;;  %v2086_v12 = vmul.f32 %v4210_v57, %v5274_v53 }
 0x65b   : > { %v4212_v38 = vpop.eup %4211 }
 0x65c   : > { %3490 = vmatprep.mubr.bf16.mxu0 %v2102_v52  ;;  %v2087_v25 = vmul.f32 %v4212_v38, %v5277_v63 }
 0x65d   : > { %3497 = vmatpush3.bf16.msra.mxu0 %v4078_v54 }
 0x65e   : > { %v2103_v58 = vpack.c.bf16 %v2087_v25, %v2086_v12 }
 0x660   : > { %3491 = vmatmul.mubr.bf16.gmra.mrb[36].mxu0 %v2103_v58 }
 0x69e   : > { %v3416_v27 = vpop.f32.mrb[16].mxu1 }
 0x69f   : > { %v2170_v13 = vpop.f32.mrb[17].mxu1 }
 0x6a0   : > { %v3417_v61 = vpop.f32.mrb[18].mxu1 }
 0x6a1   : > { %v2397_v21 = vpack.c.bf16 %v3417_v61, %v3416_v27  ;;  %v2173_v30 = vpop.f32.mrb[19].mxu1 }
 0x6a2   : > { %v2396_v47 = vpack.c.bf16 %v2173_v30, %v2170_v13 }
 0x6a4   : > { %3498 = vmatprep.mubr.msk.bf16.mxu0 %vm1395_vm1, %v2396_v47 }
 0x6a5   : > { %3499 = vmatmul.mubr.msk.bf16.vlgmr.msra.gmra.mrb[40].mxu0 %vm1395_vm1, %v2397_v21 }
 0x6eb   : > { %v3440_v53 = vpop.f32.mrb[24].mxu0 }
 0x6ec   : > { %v2235_v63 = vpop.f32.mrb[25].mxu0 }
 0x6ed   : > { %v3441_v39 = vpop.f32.mrb[26].mxu0 }
 0x6ee   : > { %v2401_v32 = vpack.c.bf16 %v3441_v39, %v3440_v53  ;;  %v3420_v20 = vpop.f32.mrb[20].mxu1  ;;  %v2238_v33 = vpop.f32.mrb[27].mxu0 }
 0x6ef   : > { %v2400_v37 = vpack.c.bf16 %v2238_v33, %v2235_v63  ;;  %v2186_v34 = vpop.f32.mrb[21].mxu1 }
 0x6f0   : > { %v3421_v40 = vpop.f32.mrb[22].mxu1 }
 0x6f1   : > { %v2399_v41 = vpack.c.bf16 %v3421_v40, %v3420_v20  ;;  %v2189_v49 = vpop.f32.mrb[23].mxu1  ;;  %3510 = vmatprep.mubr.msk.bf16.mxu1 %vm1395_vm1, %v2400_v37 }
 0x6f2   : > { %v2398_v42 = vpack.c.bf16 %v2189_v49, %v2186_v34  ;;  %3511 = vmatmul.mubr.msk.bf16.vlgmr.msra.gmra.mrb[32].mxu1 %vm1395_vm1, %v2401_v32 }
 0x6f3   : > { %3519 = vmatpush3.bf16.msra.mxu1 %v4081_v60 }
 0x6f4   : > { %3502 = vmatprep.mubr.msk.bf16.mxu0 %vm1395_vm1, %v2398_v42  ;;  %3520 = vmatprep.subr.bf16.mxu1 %v4082_v36 }
 0x6f5   : > { %3503 = vmatmul.mubr.msk.bf16.gmra.mrb[44].mxu0 %vm1395_vm1, %v2399_v41 }
 0x6f6   : > { %v3444_v50 = vpop.f32.mrb[28].mxu0 }
 0x6f7   : > { %v2251_v43 = vpop.f32.mrb[29].mxu0  ;;  %3521 = vmatpush3.bf16.msra.mxu1 %v4082_v36 }
 0x6f8   : > { %v3445_v44 = vpop.f32.mrb[30].mxu0  ;;  %3530 = vmatprep.subr.bf16.mxu1 %v4083_v46 }
 0x6f9   : > { %v2403_v14 = vpack.c.bf16 %v3445_v44, %v3444_v50  ;;  %v2254_v45 = vpop.f32.mrb[31].mxu0 }
 0x6fa   : > { %v2402_v15 = vpack.c.bf16 %v2254_v45, %v2251_v43 }
 0x6fc   : > { %3514 = vmatprep.mubr.msk.bf16.mxu1 %vm1395_vm1, %v2402_v15 }
 0x6fd   : > { %3515 = vmatmul.mubr.msk.bf16.gmra.mrb[36].mxu1 %vm1395_vm1, %v2403_v14 }
 0x6fe   : > { %v3464_v59 = vpop.f32.mrb[24].mxu1 }
 0x6ff   : > { %v2300_v24 = vpop.f32.mrb[25].mxu1 }
 0x700   : > { %v3465_v26 = vpop.f32.mrb[26].mxu1 }
 0x701   : > { %v2405_v0 = vpack.c.bf16 %v3465_v26, %v3464_v59  ;;  %v2303_v1 = vpop.f32.mrb[27].mxu1 }
 0x702   : > { %v2404_v2 = vpack.c.bf16 %v2303_v1, %v2300_v24 }
 0x704   : > { %3522 = vmatprep.mubr.msk.bf16.mxu1 %vm1395_vm1, %v2404_v2 }
 0x705   : > { %3523 = vmatmul.mubr.msk.bf16.vlgmr.msra.gmra.mrb[32].mxu1 %vm1395_vm1, %v2405_v0 }
 0x706   : > { %v3468_v51 = vpop.f32.mrb[28].mxu1  ;;  %3531 = vmatpush3.bf16.msra.mxu1 %v4083_v46 }
 0x707   : > { %v2316_v56 = vpop.f32.mrb[29].mxu1  ;;  %3532 = vmatprep.subr.bf16.mxu1 %v4084_v3 }
 0x708   : > { %v3469_v4 = vpop.f32.mrb[30].mxu1 }
 0x709   : > { %v2407_v5 = vpack.c.bf16 %v3469_v4, %v3468_v51  ;;  %v2319_v6 = vpop.f32.mrb[31].mxu1 }
 0x70a   : > { %v2406_v10 = vpack.c.bf16 %v2319_v6, %v2316_v56  ;;  %3533 = vmatpush3.bf16.msra.mxu1 %v4084_v3 }
 0x70c   : > { %3526 = vmatprep.mubr.msk.bf16.mxu1 %vm1395_vm1, %v2406_v10 }
 0x70d   : > { %3527 = vmatmul.mubr.msk.bf16.gmra.mrb[36].mxu1 %vm1395_vm1, %v2407_v5 }
 0x72b   : > { %v3488_v62 = vpop.f32.mrb[32].mxu0 }
 0x72c   : > { %v2365_v7 = vpop.f32.mrb[33].mxu0 }
 0x72d   : > { %v3489_v9 = vpop.f32.mrb[34].mxu0 }
 0x72e   : > { %v2409_v8 = vpack.c.bf16 %v3489_v9, %v3488_v62  ;;  %v2368_v11 = vpop.f32.mrb[35].mxu0 }
 0x72f   : > { %v2408_v28 = vpack.c.bf16 %v2368_v11, %v2365_v7 }
 0x731   : > { %3534 = vmatprep.mubr.msk.bf16.mxu1 %vm1395_vm1, %v2408_v28 }
 0x732   : > { %3535 = vmatmul.mubr.msk.bf16.vlgmr.msra.gmra.mrb[32].mxu1 %vm1395_vm1, %v2409_v8 }
 0x733   : > { %v3492_v17 = vpop.f32.mrb[36].mxu0 }
 0x734   : > { %v2381_v19 = vpop.f32.mrb[37].mxu0 }
 0x735   : > { %v3493_v48 = vpop.f32.mrb[38].mxu0 }
 0x736   : > { %v2411_v29 = vpack.c.bf16 %v3493_v48, %v3492_v17  ;;  %v2384_v23 = vpop.f32.mrb[39].mxu0 }
 0x737   : > { %v2410_v35 = vpack.c.bf16 %v2384_v23, %v2381_v19 }
 0x739   : > { %3538 = vmatprep.mubr.msk.bf16.mxu1 %vm1395_vm1, %v2410_v35 }
 0x73a   : > { %3539 = vmatmul.mubr.msk.bf16.gmra.mrb[36].mxu1 %vm1395_vm1, %v2411_v29 }
 0x778   : > { %v3500_v16 = vpop.f32.mrb[40].mxu0 }
 0x779   : > { %v2486_v54 = vpop.f32.mrb[41].mxu0 }
 0x77a   : > { %v3501_v18 = vpop.f32.mrb[42].mxu0 }
 0x77b   : > { %v2489_v55 = vpop.f32.mrb[43].mxu0 }
 0x7c8   : > { %v3504_v22 = vpop.f32.mrb[44].mxu0 }
 0x7c9   : > { %v2502_v57 = vpop.f32.mrb[45].mxu0 }
 0x7ca   : > { %v3505_v52 = vpop.f32.mrb[46].mxu0 }
 0x7cb   : > { %v2505_v38 = vpop.f32.mrb[47].mxu0 }
 0x805   : > { %v3536_v12 = vpop.f32.mrb[32].mxu1 }
 0x806   : > { %v3542_v25 = vadd.f32 %v3536_v12, %v3500_v16  ;;  %v2753_v58 = vpop.f32.mrb[33].mxu1 }
 0x807   : > { %v3543_v31 = vadd.f32 %v2753_v58, %v2486_v54  ;;  %v3537_v60 = vpop.f32.mrb[34].mxu1 }
 0x808   : > { %2810 = vst [vmem:[%s4816_s8 + $0x10] sm:$0xff] %v3542_v25  ;;  %v3544_v27 = vadd.f32 %v3537_v60, %v3501_v18  ;;  %v2756_v13 = vpop.f32.mrb[35].mxu1 }
 0x809   : > { %2808 = vst [vmem:[%s4816_s8] sm:$0xff] %v3543_v31  ;;  %v3545_v61 = vadd.f32 %v2756_v13, %v2489_v55 }
 0x80a   : > { %2811 = vst [vmem:[%s4816_s8 + $0x18] sm:$0xff] %v3544_v27 }
 0x80b   : > { %2809 = vst [vmem:[%s4816_s8 + $0x8] sm:$0xff] %v3545_v61 }
 0x80d   : > { %v3540_v21 = vpop.f32.mrb[36].mxu1 }
 0x80e   : > { %v3546_v30 = vadd.f32 %v3540_v21, %v3504_v22  ;;  %v2769_v47 = vpop.f32.mrb[37].mxu1 }
 0x80f   : > { %v3547_v53 = vadd.f32 %v2769_v47, %v2502_v57  ;;  %v3541_v63 = vpop.f32.mrb[38].mxu1 }
 0x810   : > { %2814 = vst [vmem:[%s4816_s8 + $0x30] sm:$0xff] %v3546_v30  ;;  %v3548_v39 = vadd.f32 %v3541_v63, %v3505_v52  ;;  %v2772_v32 = vpop.f32.mrb[39].mxu1 }
 0x811   : > { %2812 = vst [vmem:[%s4816_s8 + $0x20] sm:$0xff] %v3547_v53  ;;  %v3549_v20 = vadd.f32 %v2772_v32, %v2505_v38 }
 0x812   : > { %2815 = vst [vmem:[%s4816_s8 + $0x38] sm:$0xff] %v3548_v39 }
 0x813   : > { %2813 = vst [vmem:[%s4816_s8 + $0x28] sm:$0xff] %v3549_v20 }
 0x814   : > { %4368 = shalt.err (!%p4365_p8)
}
 0x815   : > { %s4369_s2 = scalar_lea.hbm %s5341_s12, 1024  ;;  %s4373_s9 = scalar_lea.hbm %s5454_s29, 4096 }
 0x816   : > { %p4370_p12 = scmp.ne.s32.totalorder %s5341_s12, %s4369_s2  ;;  %p4374_p9 = scmp.lt.u32.totalorder %s5341_s12, %s5454_s29 }
 0x817   : > { %p4375_p1 = scmp.lt.u32.totalorder %s4373_s9, %s4369_s2  ;;  %p4377_p4 = scmp.lt.u32.totalorder %s4369_s2, %s5341_s12 }
 0x818   : > { %p4371_p2 = pnand %p4370_p12, %p5455_p6 }
 0x819   : > { %p4376_p3 = por %p4375_p1, %p4374_p9 }
 0x81a   : > { %p4372_p7 = pneg %p4371_p2 }
 0x81b   : > { %p4378_p10 = por %p4377_p4, %p4376_p3 }
 0x81d   : > { %p4379_p13 = pnand %p4378_p10, %p4372_p7 }
 0x81f   : > { %4382 = shalt.err (!%p4379_p13)
}
 0x820   : > { %s4503_s24 = smov 128   ;;  %s4504_s1 = smov 8  }
 0x821   : > { %3616 = dma.vmem_to_hbm [thread:$0]  (%p5455_p6), %s5343_s7, 1024, %s5341_s12, %s5350_s5, %s4503_s24, %s4503_s24, %s4504_s1  }
 0x822 PF: > { %s5456_s15 = sld [smem:[#allocation18_spill]]  ;;  %s5457_s18 = sld [smem:[#allocation22_spill]] }
 0x823   : > { %p3648_p11 = scmp.ge.s32.totalorder %s4485_s28, 2 }
 0x828   : > { %s2847_s17 = sand.u32 1, %s5456_s15   ;;  %p5458_p0 = scmp.ne.s32.totalorder %s5457_s18, 0 }
 0x829   : > { %s2848_s21 = scalar_lea.sflag [#allocation6], %s2847_s17 }
 0x82a   : > { %p3636_p5 = pnand %p3648_p11, %p5458_p0 }
 0x82c   : > { %4440 = dma.done.wait (!%p3636_p5), %s2848_s21, 1024  }
 0x82d   : > { %4442 = vsyncadd (!%p3636_p5), %s2848_s21, 4294966272  ;;  %s23_s28 = sadd.s32 1, %s4485_s28   ;;  %s5459_s18 = smov %s4449_s19 }
 0x82e   : > { %p20_p8 = scmp.ge.s32.totalorder %s23_s28, 6   ;;  %s5460_s19 = smov %s4453_s20 }
 0x82f   : > { %s5461_s20 = smov %s4751_s16  ;;  %s5462_s21 = smov %s4461_s22 }
 0x830   : > { %s5463_s22 = smov %s4465_s23  ;;  %s5464_s23 = smov %s4748_s14 }
 0x831   : > { %s5465_s24 = smov %s4477_s26  ;;  %s5466_s25 = smov %s4481_s27 }
 0x832   : > { %s5467_s26 = smov %s5470_s13  ;;  %s5468_s27 = smov %s5474_s11 }
 0x833   :  { %22 = sbr.rel (!%p20_p8) target bundleno = 15 (0xf), region = 106 }
 0x83a   :  { %2853 = vsyncpa [#allocation5], 1 }
 0x83b   :  { %2855 = vsyncpa [#allocation5 + $0x1], 1 }
 0x83c   :  { %2856 = vsyncpa [#allocation8], 1 }
 0x83d   :  { %2857 = vsyncpa [#allocation11], 1 }
 0x83e   :  { %2858 = vsyncpa [#allocation6], 1 }
 0x83f   :  { %2860 = vsyncpa [#allocation6 + $0x1], 1 }

</bundles_post_ra>
